<compile_context>
chip_gen: v5e
topology: v5e:2x2
jax: 0.10.0
libtpu: 0.0.40
codegen_flags: <defaults>
</compile_context>

<pallas_src>
import functools
import math

import jax
import jax.numpy as jnp
import numpy as np
from jax import lax
from jax.experimental import pallas as pl
from jax.experimental.pallas import tpu as pltpu

# ---------------- small synthetic BERT config ----------------
VOCAB = 100
HIDDEN = 32
NUM_LAYERS = 2
NUM_HEADS = 2
HEAD_DIM = HIDDEN // NUM_HEADS
INTERMEDIATE = 64
MAX_POS = 16
TYPE_VOCAB = 2
LN_EPS = 1e-12
BATCH = 2
SEQ = 8
OUT_PAD = 128          # classifier logits padded to a lane-dense 128-wide slab
MASK_NEG = -1e9        # large-but-finite additive mask, same in kernel & reference
VEC_ROWS = 8           # packed per-layer vector slab: 8 rows x (3*HIDDEN) lanes


# ---------------- fused encoder kernel ----------------
def _encoder_kernel(x_emb_ref, mask_ref, emb_ln_ref,
                    qkv_w_ref, ao_w_ref, i_w_ref, o_w_ref, vec_ref,
                    cls_w_ref, cls_b_ref,
                    out_ref,
                    act_ref, ctx_ref,
                    *, batch, seq, n_heads, head_dim, inter_dim, eps, scale):
    hidden = n_heads * head_dim
    layer = pl.program_id(0)

    def ln(y, g, b):
        mean = jnp.mean(y, axis=-1, keepdims=True)
        var = jnp.mean(jnp.square(y - mean), axis=-1, keepdims=True)
        return (y - mean) / jnp.sqrt(var + eps) * g + b

    def mm(a_bf16, w_ref):
        # bf16 operands (weights pre-cast in the wrapper), f32 accumulation (MXU).
        return jnp.dot(a_bf16, w_ref[...], preferred_element_type=jnp.float32)

    # Embedding add already done in the wrapper; do the embedding LayerNorm once,
    # then keep the activation slab resident in VMEM scratch across all layer steps.
    @pl.when(layer == 0)
    def _():
        act_ref[...] = ln(x_emb_ref[...], emb_ln_ref[0:1, :], emb_ln_ref[1:2, :])

    x = act_ref[...]                                   # (B*S, H) f32, resident
    x_bf = x.astype(jnp.bfloat16)

    # ---- unpack the per-layer vector slab (biases / LN params), f32 ----
    vec = vec_ref[...]                                 # (8, 3H)
    qkv_b = vec[0:1, :]                                # (1, 3H)
    ao_b = vec[1:2, :hidden]
    ln1_g = vec[2:3, :hidden]
    ln1_b = vec[3:4, :hidden]
    i_b = vec[4:5, :inter_dim]
    o_b = vec[5:6, :hidden]
    ln2_g = vec[6:7, :hidden]
    ln2_b = vec[7:8, :hidden]

    # ---- fused QKV projection: one (B*S, H) @ (H, 3H) matmul ----
    qkv = mm(x_bf, qkv_w_ref) + qkv_b                  # (B*S, 3H) f32

    # ---- attention: all batches & heads inside this single grid step ----
    for b in range(batch):
        rows = slice(b * seq, (b + 1) * seq)
        m_row = mask_ref[b:b + 1, :]                   # (1, S) additive mask, resident
        for h in range(n_heads):
            lo = h * head_dim
            qh = qkv[rows, lo:lo + head_dim].astype(jnp.bfloat16)                       # (S, D)
            kh = qkv[rows, hidden + lo:hidden + lo + head_dim].astype(jnp.bfloat16)     # (S, D)
            vh = qkv[rows, 2 * hidden + lo:2 * hidden + lo + head_dim].astype(jnp.bfloat16)
            # NT matmul via dot_general (no explicit k.T relayout).
            sc = lax.dot_general(qh, kh, (((1,), (1,)), ((), ())),
                                 preferred_element_type=jnp.float32)                   # (S, S)
            sc = sc * scale + m_row
            sc = sc - jnp.max(sc, axis=-1, keepdims=True)
            p = jnp.exp(sc)
            p = p * pl.reciprocal(jnp.sum(p, axis=-1, keepdims=True), approx=True)
            ctx_ref[rows, lo:lo + head_dim] = jnp.dot(
                p.astype(jnp.bfloat16), vh, preferred_element_type=jnp.float32)

    ctx_bf = ctx_ref[...].astype(jnp.bfloat16)         # (B*S, H)

    # ---- attention output projection + residual + LayerNorm ----
    attn_out = mm(ctx_bf, ao_w_ref) + ao_b
    h1 = ln(attn_out + x, ln1_g, ln1_b)
    h1_bf = h1.astype(jnp.bfloat16)

    # ---- FFN (exact erf-GELU) + residual + LayerNorm ----
    inter = mm(h1_bf, i_w_ref) + i_b
    inter = 0.5 * inter * (1.0 + lax.erf(inter * 0.7071067811865476))
    ffn = mm(inter.astype(jnp.bfloat16), o_w_ref) + o_b
    hid = ln(ffn + h1, ln2_g, ln2_b)
    act_ref[...] = hid                                 # carry to next layer step

    # ---- classifier folded into the final layer step; 128-lane-dense output ----
    @pl.when(layer == pl.num_programs(0) - 1)
    def _():
        out_ref[...] = (mm(hid.astype(jnp.bfloat16), cls_w_ref)
                        + cls_b_ref[...]).astype(out_ref.dtype)


# ---------------- parameters (deterministic synthetic init) ----------------
def init_params(key):
    keys = iter(jax.random.split(key, 8 + NUM_LAYERS * 16))

    def nrm(shape, scale=0.02):
        return jax.random.normal(next(keys), shape, jnp.float32) * scale

    params = {
        "word_emb": nrm((VOCAB, HIDDEN)),
        "pos_emb": nrm((MAX_POS, HIDDEN)),
        "tok_emb": nrm((TYPE_VOCAB, HIDDEN)),
        "emb_ln_g": jnp.ones((HIDDEN,), jnp.float32),
        "emb_ln_b": jnp.zeros((HIDDEN,), jnp.float32),
        "cls_w": nrm((HIDDEN, 2)),
        "cls_b": nrm((2,)),
        "layers": [],
    }
    for _ in range(NUM_LAYERS):
        params["layers"].append({
            "q_w": nrm((HIDDEN, HIDDEN)), "q_b": nrm((HIDDEN,)),
            "k_w": nrm((HIDDEN, HIDDEN)), "k_b": nrm((HIDDEN,)),
            "v_w": nrm((HIDDEN, HIDDEN)), "v_b": nrm((HIDDEN,)),
            "ao_w": nrm((HIDDEN, HIDDEN)), "ao_b": nrm((HIDDEN,)),
            "ln1_g": jnp.ones((HIDDEN,), jnp.float32),
            "ln1_b": jnp.zeros((HIDDEN,), jnp.float32),
            "i_w": nrm((HIDDEN, INTERMEDIATE)), "i_b": nrm((INTERMEDIATE,)),
            "o_w": nrm((INTERMEDIATE, HIDDEN)), "o_b": nrm((HIDDEN,)),
            "ln2_g": jnp.ones((HIDDEN,), jnp.float32),
            "ln2_b": jnp.zeros((HIDDEN,), jnp.float32),
        })
    return params


def _pack_layer_params(layers):
    """Stack per-layer weights along a leading layer axis.

    Weights are fused (q/k/v) and pre-cast to bf16; all small per-layer vectors
    are packed into one f32 (VEC_ROWS, 3*HIDDEN) slab per layer.
    """
    width = 3 * HIDDEN

    def vec_slab(lp):
        rows = [
            jnp.concatenate([lp["q_b"], lp["k_b"], lp["v_b"]]),   # row 0: qkv_b (3H)
            lp["ao_b"],                                           # row 1
            lp["ln1_g"],                                          # row 2
            lp["ln1_b"],                                          # row 3
            lp["i_b"],                                            # row 4
            lp["o_b"],                                            # row 5
            lp["ln2_g"],                                          # row 6
            lp["ln2_b"],                                          # row 7
        ]
        return jnp.stack([jnp.pad(r, (0, width - r.shape[0])) for r in rows])

    stack = lambda f: jnp.stack([f(lp) for lp in layers])
    return dict(
        qkv_w=stack(lambda lp: jnp.concatenate(
            [lp["q_w"], lp["k_w"], lp["v_w"]], axis=1)).astype(jnp.bfloat16),
        ao_w=stack(lambda lp: lp["ao_w"]).astype(jnp.bfloat16),
        i_w=stack(lambda lp: lp["i_w"]).astype(jnp.bfloat16),
        o_w=stack(lambda lp: lp["o_w"]).astype(jnp.bfloat16),
        vec=stack(vec_slab),                                      # f32
    )


# ---------------- forward pass: one pallas_call for the whole model ----------------
@jax.jit
def qabert_forward(params, input_ids, token_type_ids, attention_mask):
    b, s = input_ids.shape
    h_dim = HIDDEN

    # embedding gathers are JAX glue; the add + LayerNorm runs inside the kernel
    word = params["word_emb"][input_ids]
    tok = params["tok_emb"][token_type_ids]
    pos = params["pos_emb"][:s][None]
    x_emb = (word + tok + pos).reshape(b * s, h_dim)

    # additive attention mask, (B, S), loaded once and kept resident in VMEM
    add_mask = (1.0 - attention_mask.astype(jnp.float32)) * MASK_NEG

    packed = _pack_layer_params(params["layers"])
    emb_ln = jnp.stack([params["emb_ln_g"], params["emb_ln_b"]])            # (2, H) f32
    cls_w_pad = jnp.zeros((h_dim, OUT_PAD), jnp.float32).at[:, :2].set(
        params["cls_w"]).astype(jnp.bfloat16)
    cls_b_pad = jnp.zeros((1, OUT_PAD), jnp.float32).at[:, :2].set(params["cls_b"])

    kernel = functools.partial(
        _encoder_kernel, batch=b, seq=s, n_heads=NUM_HEADS, head_dim=HEAD_DIM,
        inter_dim=INTERMEDIATE, eps=LN_EPS, scale=1.0 / math.sqrt(HEAD_DIM))

    const2d = lambda shape: pl.BlockSpec(shape, lambda l: (0, 0))
    per_layer = lambda shape: pl.BlockSpec((pl.Squeezed(),) + shape, lambda l: (l, 0, 0))

    out = pl.pallas_call(
        kernel,
        grid=(NUM_LAYERS,),
        in_specs=[
            const2d((b * s, h_dim)),             # x_emb
            const2d((b, s)),                     # additive mask
            const2d((2, h_dim)),                 # emb LN gamma/beta
            per_layer((h_dim, 3 * h_dim)),       # qkv_w (bf16)
            per_layer((h_dim, h_dim)),           # ao_w  (bf16)
            per_layer((h_dim, INTERMEDIATE)),    # i_w   (bf16)
            per_layer((INTERMEDIATE, h_dim)),    # o_w   (bf16)
            per_layer((VEC_ROWS, 3 * h_dim)),    # packed biases / LN params (f32)
            const2d((h_dim, OUT_PAD)),           # cls_w (lane-padded, bf16)
            const2d((1, OUT_PAD)),               # cls_b (lane-padded, f32)
        ],
        out_specs=pl.BlockSpec((b * s, OUT_PAD), lambda l: (0, 0)),
        out_shape=jax.ShapeDtypeStruct((b * s, OUT_PAD), jnp.float32),
        scratch_shapes=[
            pltpu.VMEM((b * s, h_dim), jnp.float32),   # resident activation carry
            pltpu.VMEM((b * s, h_dim), jnp.float32),   # per-head context assembly
        ],
        compiler_params=pltpu.CompilerParams(
            dimension_semantics=("arbitrary",)),       # sequential layer carry
    )(x_emb, add_mask, emb_ln,
      packed["qkv_w"], packed["ao_w"], packed["i_w"], packed["o_w"], packed["vec"],
      cls_w_pad, cls_b_pad)

    return out[:, :2].reshape(b, s, 2)


# ---------------- pure-JAX reference for correctness ----------------
def ref_forward(params, input_ids, token_type_ids, attention_mask):
    b, s = input_ids.shape

    def ln(x, g, bb):
        mean = jnp.mean(x, axis=-1, keepdims=True)
        var = jnp.mean(jnp.square(x - mean), axis=-1, keepdims=True)
        return (x - mean) / jnp.sqrt(var + LN_EPS) * g + bb

    def gelu(x):
        return 0.5 * x * (1.0 + lax.erf(x * 0.7071067811865476))

    h = ln(params["word_emb"][input_ids] + params["tok_emb"][token_type_ids]
           + params["pos_emb"][:s][None], params["emb_ln_g"], params["emb_ln_b"])
    ext = (1.0 - attention_mask[:, None, None, :].astype(jnp.float32)) * MASK_NEG
    for lp in params["layers"]:
        q = (h @ lp["q_w"] + lp["q_b"]).reshape(b, s, NUM_HEADS, HEAD_DIM).transpose(0, 2, 1, 3)
        k = (h @ lp["k_w"] + lp["k_b"]).reshape(b, s, NUM_HEADS, HEAD_DIM).transpose(0, 2, 1, 3)
        v = (h @ lp["v_w"] + lp["v_b"]).reshape(b, s, NUM_HEADS, HEAD_DIM).transpose(0, 2, 1, 3)
        sc = jnp.einsum("bhqd,bhkd->bhqk", q, k) / math.sqrt(HEAD_DIM) + ext
        p = jax.nn.softmax(sc, axis=-1)
        ctx = jnp.einsum("bhqk,bhkd->bhqd", p, v).transpose(0, 2, 1, 3).reshape(b, s, HIDDEN)
        a = ln(ctx @ lp["ao_w"] + lp["ao_b"] + h, lp["ln1_g"], lp["ln1_b"])
        f = gelu(a @ lp["i_w"] + lp["i_b"]) @ lp["o_w"] + lp["o_b"]
        h = ln(f + a, lp["ln2_g"], lp["ln2_b"])
    return h @ params["cls_w"] + params["cls_b"]


if __name__ == "__main__":
    key = jax.random.PRNGKey(0)
    pkey, ikey = jax.random.split(key)
    params = init_params(pkey)

    input_ids = jax.random.randint(ikey, (BATCH, SEQ), 0, VOCAB, dtype=jnp.int32)
    token_type_ids = jnp.concatenate(
        [jnp.zeros((BATCH, SEQ // 2), jnp.int32),
         jnp.ones((BATCH, SEQ // 2), jnp.int32)], axis=1)
    attention_mask = jnp.array([[1, 1, 1, 1, 1, 1, 1, 1],
                                [1, 1, 1, 1, 1, 1, 0, 0]], dtype=jnp.int32)

    logits = qabert_forward(params, input_ids, token_type_ids, attention_mask)
    logits = jax.block_until_ready(logits)
    assert logits.shape == (BATCH, SEQ, 2), logits.shape

    # High-precision reference; kernel uses bf16-in / f32-acc MXU matmuls, so the
    # tolerance is looser than a pure-f32 comparison would be.
    with jax.default_matmul_precision("highest"):
        ref = ref_forward(params, input_ids, token_type_ids, attention_mask)
    np.testing.assert_allclose(np.asarray(logits), np.asarray(ref),
                               rtol=5e-2, atol=5e-3)
    print("KERNEL_OK")
</pallas_src>

<mosaic_0001>
module attributes {stable_mosaic.version = 11 : i64} {
  func.func @_encoder_kernel(%arg0: i32, %arg1: memref<16x32xf32, #tpu.memory_space<vmem>>, %arg2: memref<2x8xf32, #tpu.memory_space<vmem>>, %arg3: memref<2x32xf32, #tpu.memory_space<vmem>>, %arg4: memref<1x32x96xbf16, #tpu.memory_space<vmem>>, %arg5: memref<1x32x32xbf16, #tpu.memory_space<vmem>>, %arg6: memref<1x32x64xbf16, #tpu.memory_space<vmem>>, %arg7: memref<1x64x32xbf16, #tpu.memory_space<vmem>>, %arg8: memref<1x8x96xf32, #tpu.memory_space<vmem>>, %arg9: memref<32x128xbf16, #tpu.memory_space<vmem>>, %arg10: memref<1x128xf32, #tpu.memory_space<vmem>>, %arg11: memref<16x128xf32, #tpu.memory_space<vmem>>, %arg12: memref<16x32xf32, #tpu.memory_space<vmem>>, %arg13: memref<16x32xf32, #tpu.memory_space<vmem>>) attributes {dimension_semantics = [#tpu.dimension_semantics<arbitrary>], iteration_bounds = array<i64: 2>, scalar_prefetch = 0 : i64, scratch_operands = 2 : i64, tpu.core_type = #tpu.core_type<tc>, window_params = [{pipeline_mode = #tpu.pipeline_mode<synchronous>, transform_indices = @transform_0, window_bounds = array<i64: 16, 32>}, {pipeline_mode = #tpu.pipeline_mode<synchronous>, transform_indices = @transform_1, window_bounds = array<i64: 2, 8>}, {pipeline_mode = #tpu.pipeline_mode<synchronous>, transform_indices = @transform_2, window_bounds = array<i64: 2, 32>}, {transform_indices = @transform_3, window_bounds = array<i64: 1, 32, 96>}, {transform_indices = @transform_4, window_bounds = array<i64: 1, 32, 32>}, {transform_indices = @transform_5, window_bounds = array<i64: 1, 32, 64>}, {transform_indices = @transform_6, window_bounds = array<i64: 1, 64, 32>}, {transform_indices = @transform_7, window_bounds = array<i64: 1, 8, 96>}, {pipeline_mode = #tpu.pipeline_mode<synchronous>, transform_indices = @transform_8, window_bounds = array<i64: 32, 128>}, {pipeline_mode = #tpu.pipeline_mode<synchronous>, transform_indices = @transform_9, window_bounds = array<i64: 1, 128>}, {pipeline_mode = #tpu.pipeline_mode<synchronous>, transform_indices = @transform_10, window_bounds = array<i64: 16, 128>}]} {
    %c0_i32 = arith.constant 0 : i32
    %0 = arith.cmpi eq, %arg0, %c0_i32 : i32
    %1 = arith.extui %0 : i1 to i32
    %c0_i32_0 = arith.constant 0 : i32
    %2 = arith.cmpi ne, %1, %c0_i32_0 : i32
    scf.if %2 {
      %c0_67 = arith.constant 0 : index
      %c0_68 = arith.constant 0 : index
      %195 = vector.load %arg1[%c0_67, %c0_68] : memref<16x32xf32, #tpu.memory_space<vmem>>, vector<16x32xf32>
      %c0_69 = arith.constant 0 : index
      %c0_70 = arith.constant 0 : index
      %196 = vector.load %arg3[%c0_69, %c0_70] : memref<2x32xf32, #tpu.memory_space<vmem>>, vector<1x32xf32>
      %c1_71 = arith.constant 1 : index
      %c0_72 = arith.constant 0 : index
      %197 = vector.load %arg3[%c1_71, %c0_72] : memref<2x32xf32, #tpu.memory_space<vmem>>, vector<1x32xf32>
      %cst_73 = arith.constant dense<0.000000e+00> : vector<16xf32>
      %198 = vector.multi_reduction <add>, %195, %cst_73 [1] : vector<16x32xf32> to vector<16xf32>
      %199 = vector.shape_cast %198 : vector<16xf32> to vector<16x1xf32>
      %cst_74 = arith.constant 3.200000e+01 : f32
      %200 = vector.broadcast %cst_74 : f32 to vector<16x1xf32>
      %201 = arith.divf %199, %200 : vector<16x1xf32>
      %202 = vector.broadcast %201 : vector<16x1xf32> to vector<16x32xf32>
      %203 = arith.subf %195, %202 : vector<16x32xf32>
      %204 = arith.mulf %203, %203 : vector<16x32xf32>
      %cst_75 = arith.constant dense<0.000000e+00> : vector<16xf32>
      %205 = vector.multi_reduction <add>, %204, %cst_75 [1] : vector<16x32xf32> to vector<16xf32>
      %206 = vector.shape_cast %205 : vector<16xf32> to vector<16x1xf32>
      %cst_76 = arith.constant 3.200000e+01 : f32
      %207 = vector.broadcast %cst_76 : f32 to vector<16x1xf32>
      %208 = arith.divf %206, %207 : vector<16x1xf32>
      %209 = vector.broadcast %201 : vector<16x1xf32> to vector<16x32xf32>
      %210 = arith.subf %195, %209 : vector<16x32xf32>
      %cst_77 = arith.constant 9.99999996E-13 : f32
      %211 = vector.broadcast %cst_77 : f32 to vector<16x1xf32>
      %212 = arith.addf %208, %211 : vector<16x1xf32>
      %213 = math.sqrt %212 : vector<16x1xf32>
      %214 = vector.broadcast %213 : vector<16x1xf32> to vector<16x32xf32>
      %215 = arith.divf %210, %214 : vector<16x32xf32>
      %216 = vector.broadcast %196 : vector<1x32xf32> to vector<16x32xf32>
      %217 = arith.mulf %215, %216 : vector<16x32xf32>
      %218 = vector.broadcast %197 : vector<1x32xf32> to vector<16x32xf32>
      %219 = arith.addf %217, %218 : vector<16x32xf32>
      %c0_78 = arith.constant 0 : index
      %c0_79 = arith.constant 0 : index
      %220 = vector.load %arg12[%c0_78, %c0_79] : memref<16x32xf32, #tpu.memory_space<vmem>>, vector<16x32xf32>
      tpu.vector_store %arg12[%c0_78, %c0_79], %219 {strides = array<i32>} : memref<16x32xf32, #tpu.memory_space<vmem>>, vector<16x32xf32>,
    } else {
    }
    %c0 = arith.constant 0 : index
    %c0_1 = arith.constant 0 : index
    %3 = vector.load %arg12[%c0, %c0_1] : memref<16x32xf32, #tpu.memory_space<vmem>>, vector<16x32xf32>
    %4 = arith.truncf %3 : vector<16x32xf32> to vector<16x32xbf16>
    %c0_2 = arith.constant 0 : index
    %c0_3 = arith.constant 0 : index
    %c0_4 = arith.constant 0 : index
    %5 = vector.load %arg8[%c0_2, %c0_3, %c0_4] : memref<1x8x96xf32, #tpu.memory_space<vmem>>, vector<1x8x96xf32>
    %6 = vector.shape_cast %5 : vector<1x8x96xf32> to vector<8x96xf32>
    %7 = vector.extract_strided_slice %6 {offsets = [0, 0], sizes = [1, 96], strides = [1, 1]} : vector<8x96xf32> to vector<1x96xf32>
    %8 = vector.extract_strided_slice %6 {offsets = [1, 0], sizes = [1, 32], strides = [1, 1]} : vector<8x96xf32> to vector<1x32xf32>
    %9 = vector.extract_strided_slice %6 {offsets = [2, 0], sizes = [1, 32], strides = [1, 1]} : vector<8x96xf32> to vector<1x32xf32>
    %10 = vector.extract_strided_slice %6 {offsets = [3, 0], sizes = [1, 32], strides = [1, 1]} : vector<8x96xf32> to vector<1x32xf32>
    %11 = vector.extract_strided_slice %6 {offsets = [4, 0], sizes = [1, 64], strides = [1, 1]} : vector<8x96xf32> to vector<1x64xf32>
    %12 = vector.extract_strided_slice %6 {offsets = [5, 0], sizes = [1, 32], strides = [1, 1]} : vector<8x96xf32> to vector<1x32xf32>
    %13 = vector.extract_strided_slice %6 {offsets = [6, 0], sizes = [1, 32], strides = [1, 1]} : vector<8x96xf32> to vector<1x32xf32>
    %14 = vector.extract_strided_slice %6 {offsets = [7, 0], sizes = [1, 32], strides = [1, 1]} : vector<8x96xf32> to vector<1x32xf32>
    %c0_5 = arith.constant 0 : index
    %c0_6 = arith.constant 0 : index
    %c0_7 = arith.constant 0 : index
    %15 = vector.load %arg4[%c0_5, %c0_6, %c0_7] : memref<1x32x96xbf16, #tpu.memory_space<vmem>>, vector<1x32x96xbf16>
    %16 = vector.shape_cast %15 : vector<1x32x96xbf16> to vector<32x96xbf16>
    %cst = arith.constant dense<0.000000e+00> : vector<16x96xf32>
    %17 = tpu.matmul %4, %16, %cst {dimension_numbers = #tpu.dot_dimension_numbers<[1], [0], [0], [1], [0, 0, 1, 1], [], []>} : vector<16x32xbf16>, vector<32x96xbf16>, vector<16x96xf32> -> vector<16x96xf32>
    %18 = vector.broadcast %7 : vector<1x96xf32> to vector<16x96xf32>
    %19 = arith.addf %17, %18 : vector<16x96xf32>
    %c0_8 = arith.constant 0 : index
    %c0_9 = arith.constant 0 : index
    %20 = vector.load %arg2[%c0_8, %c0_9] : memref<2x8xf32, #tpu.memory_space<vmem>>, vector<1x8xf32>
    %21 = vector.extract_strided_slice %19 {offsets = [0, 0], sizes = [8, 16], strides = [1, 1]} : vector<16x96xf32> to vector<8x16xf32>
    %22 = arith.truncf %21 : vector<8x16xf32> to vector<8x16xbf16>
    %23 = vector.extract_strided_slice %19 {offsets = [0, 32], sizes = [8, 16], strides = [1, 1]} : vector<16x96xf32> to vector<8x16xf32>
    %24 = arith.truncf %23 : vector<8x16xf32> to vector<8x16xbf16>
    %25 = vector.extract_strided_slice %19 {offsets = [0, 64], sizes = [8, 16], strides = [1, 1]} : vector<16x96xf32> to vector<8x16xf32>
    %26 = arith.truncf %25 : vector<8x16xf32> to vector<8x16xbf16>
    %cst_10 = arith.constant dense<0.000000e+00> : vector<8x8xf32>
    %27 = tpu.matmul %22, %24, %cst_10 {dimension_numbers = #tpu.dot_dimension_numbers<[1], [1], [0], [0], [0, 0, 1, 0], [], []>} : vector<8x16xbf16>, vector<8x16xbf16>, vector<8x8xf32> -> vector<8x8xf32>
    %cst_11 = arith.constant 2.500000e-01 : f32
    %28 = vector.broadcast %cst_11 : f32 to vector<8x8xf32>
    %29 = arith.mulf %27, %28 : vector<8x8xf32>
    %30 = vector.broadcast %20 : vector<1x8xf32> to vector<8x8xf32>
    %31 = arith.addf %29, %30 : vector<8x8xf32>
    %cst_12 = arith.constant dense<0xFF800000> : vector<8xf32>
    %32 = vector.multi_reduction <maximumf>, %31, %cst_12 [1] : vector<8x8xf32> to vector<8xf32>
    %33 = vector.shape_cast %32 : vector<8xf32> to vector<8x1xf32>
    %34 = vector.broadcast %33 : vector<8x1xf32> to vector<8x8xf32>
    %35 = arith.subf %31, %34 : vector<8x8xf32>
    %36 = math.exp %35 : vector<8x8xf32>
    %cst_13 = arith.constant dense<0.000000e+00> : vector<8xf32>
    %37 = vector.multi_reduction <add>, %36, %cst_13 [1] : vector<8x8xf32> to vector<8xf32>
    %38 = vector.shape_cast %37 : vector<8xf32> to vector<8x1xf32>
    %39 = tpu.reciprocal %38 {approx = true} : vector<8x1xf32> -> vector<8x1xf32>
    %40 = vector.broadcast %39 : vector<8x1xf32> to vector<8x8xf32>
    %41 = arith.mulf %36, %40 : vector<8x8xf32>
    %42 = arith.truncf %41 : vector<8x8xf32> to vector<8x8xbf16>
    %cst_14 = arith.constant dense<0.000000e+00> : vector<8x16xf32>
    %43 = tpu.matmul %42, %26, %cst_14 {dimension_numbers = #tpu.dot_dimension_numbers<[1], [0], [0], [1], [0, 0, 1, 1], [], []>} : vector<8x8xbf16>, vector<8x16xbf16>, vector<8x16xf32> -> vector<8x16xf32>
    %c0_15 = arith.constant 0 : index
    %c0_16 = arith.constant 0 : index
    %44 = vector.load %arg13[%c0_15, %c0_16] : memref<16x32xf32, #tpu.memory_space<vmem>>, vector<8x16xf32>
    tpu.vector_store %arg13[%c0_15, %c0_16], %43 {strides = array<i32>} : memref<16x32xf32, #tpu.memory_space<vmem>>, vector<8x16xf32>,
    %45 = vector.extract_strided_slice %19 {offsets = [0, 16], sizes = [8, 16], strides = [1, 1]} : vector<16x96xf32> to vector<8x16xf32>
    %46 = arith.truncf %45 : vector<8x16xf32> to vector<8x16xbf16>
    %47 = vector.extract_strided_slice %19 {offsets = [0, 48], sizes = [8, 16], strides = [1, 1]} : vector<16x96xf32> to vector<8x16xf32>
    %48 = arith.truncf %47 : vector<8x16xf32> to vector<8x16xbf16>
    %49 = vector.extract_strided_slice %19 {offsets = [0, 80], sizes = [8, 16], strides = [1, 1]} : vector<16x96xf32> to vector<8x16xf32>
    %50 = arith.truncf %49 : vector<8x16xf32> to vector<8x16xbf16>
    %cst_17 = arith.constant dense<0.000000e+00> : vector<8x8xf32>
    %51 = tpu.matmul %46, %48, %cst_17 {dimension_numbers = #tpu.dot_dimension_numbers<[1], [1], [0], [0], [0, 0, 1, 0], [], []>} : vector<8x16xbf16>, vector<8x16xbf16>, vector<8x8xf32> -> vector<8x8xf32>
    %cst_18 = arith.constant 2.500000e-01 : f32
    %52 = vector.broadcast %cst_18 : f32 to vector<8x8xf32>
    %53 = arith.mulf %51, %52 : vector<8x8xf32>
    %54 = vector.broadcast %20 : vector<1x8xf32> to vector<8x8xf32>
    %55 = arith.addf %53, %54 : vector<8x8xf32>
    %cst_19 = arith.constant dense<0xFF800000> : vector<8xf32>
    %56 = vector.multi_reduction <maximumf>, %55, %cst_19 [1] : vector<8x8xf32> to vector<8xf32>
    %57 = vector.shape_cast %56 : vector<8xf32> to vector<8x1xf32>
    %58 = vector.broadcast %57 : vector<8x1xf32> to vector<8x8xf32>
    %59 = arith.subf %55, %58 : vector<8x8xf32>
    %60 = math.exp %59 : vector<8x8xf32>
    %cst_20 = arith.constant dense<0.000000e+00> : vector<8xf32>
    %61 = vector.multi_reduction <add>, %60, %cst_20 [1] : vector<8x8xf32> to vector<8xf32>
    %62 = vector.shape_cast %61 : vector<8xf32> to vector<8x1xf32>
    %63 = tpu.reciprocal %62 {approx = true} : vector<8x1xf32> -> vector<8x1xf32>
    %64 = vector.broadcast %63 : vector<8x1xf32> to vector<8x8xf32>
    %65 = arith.mulf %60, %64 : vector<8x8xf32>
    %66 = arith.truncf %65 : vector<8x8xf32> to vector<8x8xbf16>
    %cst_21 = arith.constant dense<0.000000e+00> : vector<8x16xf32>
    %67 = tpu.matmul %66, %50, %cst_21 {dimension_numbers = #tpu.dot_dimension_numbers<[1], [0], [0], [1], [0, 0, 1, 1], [], []>} : vector<8x8xbf16>, vector<8x16xbf16>, vector<8x16xf32> -> vector<8x16xf32>
    %c0_22 = arith.constant 0 : index
    %c16 = arith.constant 16 : index
    %68 = vector.load %arg13[%c0_22, %c16] : memref<16x32xf32, #tpu.memory_space<vmem>>, vector<8x16xf32>
    tpu.vector_store %arg13[%c0_22, %c16], %67 {strides = array<i32>} : memref<16x32xf32, #tpu.memory_space<vmem>>, vector<8x16xf32>,
    %c1 = arith.constant 1 : index
    %c0_23 = arith.constant 0 : index
    %69 = vector.load %arg2[%c1, %c0_23] : memref<2x8xf32, #tpu.memory_space<vmem>>, vector<1x8xf32>
    %70 = vector.extract_strided_slice %19 {offsets = [8, 0], sizes = [8, 16], strides = [1, 1]} : vector<16x96xf32> to vector<8x16xf32>
    %71 = arith.truncf %70 : vector<8x16xf32> to vector<8x16xbf16>
    %72 = vector.extract_strided_slice %19 {offsets = [8, 32], sizes = [8, 16], strides = [1, 1]} : vector<16x96xf32> to vector<8x16xf32>
    %73 = arith.truncf %72 : vector<8x16xf32> to vector<8x16xbf16>
    %74 = vector.extract_strided_slice %19 {offsets = [8, 64], sizes = [8, 16], strides = [1, 1]} : vector<16x96xf32> to vector<8x16xf32>
    %75 = arith.truncf %74 : vector<8x16xf32> to vector<8x16xbf16>
    %cst_24 = arith.constant dense<0.000000e+00> : vector<8x8xf32>
    %76 = tpu.matmul %71, %73, %cst_24 {dimension_numbers = #tpu.dot_dimension_numbers<[1], [1], [0], [0], [0, 0, 1, 0], [], []>} : vector<8x16xbf16>, vector<8x16xbf16>, vector<8x8xf32> -> vector<8x8xf32>
    %cst_25 = arith.constant 2.500000e-01 : f32
    %77 = vector.broadcast %cst_25 : f32 to vector<8x8xf32>
    %78 = arith.mulf %76, %77 : vector<8x8xf32>
    %79 = vector.broadcast %69 : vector<1x8xf32> to vector<8x8xf32>
    %80 = arith.addf %78, %79 : vector<8x8xf32>
    %cst_26 = arith.constant dense<0xFF800000> : vector<8xf32>
    %81 = vector.multi_reduction <maximumf>, %80, %cst_26 [1] : vector<8x8xf32> to vector<8xf32>
    %82 = vector.shape_cast %81 : vector<8xf32> to vector<8x1xf32>
    %83 = vector.broadcast %82 : vector<8x1xf32> to vector<8x8xf32>
    %84 = arith.subf %80, %83 : vector<8x8xf32>
    %85 = math.exp %84 : vector<8x8xf32>
    %cst_27 = arith.constant dense<0.000000e+00> : vector<8xf32>
    %86 = vector.multi_reduction <add>, %85, %cst_27 [1] : vector<8x8xf32> to vector<8xf32>
    %87 = vector.shape_cast %86 : vector<8xf32> to vector<8x1xf32>
    %88 = tpu.reciprocal %87 {approx = true} : vector<8x1xf32> -> vector<8x1xf32>
    %89 = vector.broadcast %88 : vector<8x1xf32> to vector<8x8xf32>
    %90 = arith.mulf %85, %89 : vector<8x8xf32>
    %91 = arith.truncf %90 : vector<8x8xf32> to vector<8x8xbf16>
    %cst_28 = arith.constant dense<0.000000e+00> : vector<8x16xf32>
    %92 = tpu.matmul %91, %75, %cst_28 {dimension_numbers = #tpu.dot_dimension_numbers<[1], [0], [0], [1], [0, 0, 1, 1], [], []>} : vector<8x8xbf16>, vector<8x16xbf16>, vector<8x16xf32> -> vector<8x16xf32>
    %c8 = arith.constant 8 : index
    %c0_29 = arith.constant 0 : index
    %93 = vector.load %arg13[%c8, %c0_29] : memref<16x32xf32, #tpu.memory_space<vmem>>, vector<8x16xf32>
    tpu.vector_store %arg13[%c8, %c0_29], %92 {strides = array<i32>} : memref<16x32xf32, #tpu.memory_space<vmem>>, vector<8x16xf32>,
    %94 = vector.extract_strided_slice %19 {offsets = [8, 16], sizes = [8, 16], strides = [1, 1]} : vector<16x96xf32> to vector<8x16xf32>
    %95 = arith.truncf %94 : vector<8x16xf32> to vector<8x16xbf16>
    %96 = vector.extract_strided_slice %19 {offsets = [8, 48], sizes = [8, 16], strides = [1, 1]} : vector<16x96xf32> to vector<8x16xf32>
    %97 = arith.truncf %96 : vector<8x16xf32> to vector<8x16xbf16>
    %98 = vector.extract_strided_slice %19 {offsets = [8, 80], sizes = [8, 16], strides = [1, 1]} : vector<16x96xf32> to vector<8x16xf32>
    %99 = arith.truncf %98 : vector<8x16xf32> to vector<8x16xbf16>
    %cst_30 = arith.constant dense<0.000000e+00> : vector<8x8xf32>
    %100 = tpu.matmul %95, %97, %cst_30 {dimension_numbers = #tpu.dot_dimension_numbers<[1], [1], [0], [0], [0, 0, 1, 0], [], []>} : vector<8x16xbf16>, vector<8x16xbf16>, vector<8x8xf32> -> vector<8x8xf32>
    %cst_31 = arith.constant 2.500000e-01 : f32
    %101 = vector.broadcast %cst_31 : f32 to vector<8x8xf32>
    %102 = arith.mulf %100, %101 : vector<8x8xf32>
    %103 = vector.broadcast %69 : vector<1x8xf32> to vector<8x8xf32>
    %104 = arith.addf %102, %103 : vector<8x8xf32>
    %cst_32 = arith.constant dense<0xFF800000> : vector<8xf32>
    %105 = vector.multi_reduction <maximumf>, %104, %cst_32 [1] : vector<8x8xf32> to vector<8xf32>
    %106 = vector.shape_cast %105 : vector<8xf32> to vector<8x1xf32>
    %107 = vector.broadcast %106 : vector<8x1xf32> to vector<8x8xf32>
    %108 = arith.subf %104, %107 : vector<8x8xf32>
    %109 = math.exp %108 : vector<8x8xf32>
    %cst_33 = arith.constant dense<0.000000e+00> : vector<8xf32>
    %110 = vector.multi_reduction <add>, %109, %cst_33 [1] : vector<8x8xf32> to vector<8xf32>
    %111 = vector.shape_cast %110 : vector<8xf32> to vector<8x1xf32>
    %112 = tpu.reciprocal %111 {approx = true} : vector<8x1xf32> -> vector<8x1xf32>
    %113 = vector.broadcast %112 : vector<8x1xf32> to vector<8x8xf32>
    %114 = arith.mulf %109, %113 : vector<8x8xf32>
    %115 = arith.truncf %114 : vector<8x8xf32> to vector<8x8xbf16>
    %cst_34 = arith.constant dense<0.000000e+00> : vector<8x16xf32>
    %116 = tpu.matmul %115, %99, %cst_34 {dimension_numbers = #tpu.dot_dimension_numbers<[1], [0], [0], [1], [0, 0, 1, 1], [], []>} : vector<8x8xbf16>, vector<8x16xbf16>, vector<8x16xf32> -> vector<8x16xf32>
    %c8_35 = arith.constant 8 : index
    %c16_36 = arith.constant 16 : index
    %117 = vector.load %arg13[%c8_35, %c16_36] : memref<16x32xf32, #tpu.memory_space<vmem>>, vector<8x16xf32>
    tpu.vector_store %arg13[%c8_35, %c16_36], %116 {strides = array<i32>} : memref<16x32xf32, #tpu.memory_space<vmem>>, vector<8x16xf32>,
    %c0_37 = arith.constant 0 : index
    %c0_38 = arith.constant 0 : index
    %118 = vector.load %arg13[%c0_37, %c0_38] : memref<16x32xf32, #tpu.memory_space<vmem>>, vector<16x32xf32>
    %119 = arith.truncf %118 : vector<16x32xf32> to vector<16x32xbf16>
    %c0_39 = arith.constant 0 : index
    %c0_40 = arith.constant 0 : index
    %c0_41 = arith.constant 0 : index
    %120 = vector.load %arg5[%c0_39, %c0_40, %c0_41] : memref<1x32x32xbf16, #tpu.memory_space<vmem>>, vector<1x32x32xbf16>
    %121 = vector.shape_cast %120 : vector<1x32x32xbf16> to vector<32x32xbf16>
    %cst_42 = arith.constant dense<0.000000e+00> : vector<16x32xf32>
    %122 = tpu.matmul %119, %121, %cst_42 {dimension_numbers = #tpu.dot_dimension_numbers<[1], [0], [0], [1], [0, 0, 1, 1], [], []>} : vector<16x32xbf16>, vector<32x32xbf16>, vector<16x32xf32> -> vector<16x32xf32>
    %123 = vector.broadcast %8 : vector<1x32xf32> to vector<16x32xf32>
    %124 = arith.addf %122, %123 : vector<16x32xf32>
    %125 = arith.addf %124, %3 : vector<16x32xf32>
    %cst_43 = arith.constant dense<0.000000e+00> : vector<16xf32>
    %126 = vector.multi_reduction <add>, %125, %cst_43 [1] : vector<16x32xf32> to vector<16xf32>
    %127 = vector.shape_cast %126 : vector<16xf32> to vector<16x1xf32>
    %cst_44 = arith.constant 3.200000e+01 : f32
    %128 = vector.broadcast %cst_44 : f32 to vector<16x1xf32>
    %129 = arith.divf %127, %128 : vector<16x1xf32>
    %130 = vector.broadcast %129 : vector<16x1xf32> to vector<16x32xf32>
    %131 = arith.subf %125, %130 : vector<16x32xf32>
    %132 = arith.mulf %131, %131 : vector<16x32xf32>
    %cst_45 = arith.constant dense<0.000000e+00> : vector<16xf32>
    %133 = vector.multi_reduction <add>, %132, %cst_45 [1] : vector<16x32xf32> to vector<16xf32>
    %134 = vector.shape_cast %133 : vector<16xf32> to vector<16x1xf32>
    %cst_46 = arith.constant 3.200000e+01 : f32
    %135 = vector.broadcast %cst_46 : f32 to vector<16x1xf32>
    %136 = arith.divf %134, %135 : vector<16x1xf32>
    %137 = vector.broadcast %129 : vector<16x1xf32> to vector<16x32xf32>
    %138 = arith.subf %125, %137 : vector<16x32xf32>
    %cst_47 = arith.constant 9.99999996E-13 : f32
    %139 = vector.broadcast %cst_47 : f32 to vector<16x1xf32>
    %140 = arith.addf %136, %139 : vector<16x1xf32>
    %141 = math.sqrt %140 : vector<16x1xf32>
    %142 = vector.broadcast %141 : vector<16x1xf32> to vector<16x32xf32>
    %143 = arith.divf %138, %142 : vector<16x32xf32>
    %144 = vector.broadcast %9 : vector<1x32xf32> to vector<16x32xf32>
    %145 = arith.mulf %143, %144 : vector<16x32xf32>
    %146 = vector.broadcast %10 : vector<1x32xf32> to vector<16x32xf32>
    %147 = arith.addf %145, %146 : vector<16x32xf32>
    %148 = arith.truncf %147 : vector<16x32xf32> to vector<16x32xbf16>
    %c0_48 = arith.constant 0 : index
    %c0_49 = arith.constant 0 : index
    %c0_50 = arith.constant 0 : index
    %149 = vector.load %arg6[%c0_48, %c0_49, %c0_50] : memref<1x32x64xbf16, #tpu.memory_space<vmem>>, vector<1x32x64xbf16>
    %150 = vector.shape_cast %149 : vector<1x32x64xbf16> to vector<32x64xbf16>
    %cst_51 = arith.constant dense<0.000000e+00> : vector<16x64xf32>
    %151 = tpu.matmul %148, %150, %cst_51 {dimension_numbers = #tpu.dot_dimension_numbers<[1], [0], [0], [1], [0, 0, 1, 1], [], []>} : vector<16x32xbf16>, vector<32x64xbf16>, vector<16x64xf32> -> vector<16x64xf32>
    %152 = vector.broadcast %11 : vector<1x64xf32> to vector<16x64xf32>
    %153 = arith.addf %151, %152 : vector<16x64xf32>
    %cst_52 = arith.constant 5.000000e-01 : f32
    %154 = vector.broadcast %cst_52 : f32 to vector<16x64xf32>
    %155 = arith.mulf %154, %153 : vector<16x64xf32>
    %cst_53 = arith.constant 0.707106769 : f32
    %156 = vector.broadcast %cst_53 : f32 to vector<16x64xf32>
    %157 = arith.mulf %153, %156 : vector<16x64xf32>
    %158 = math.erf %157 : vector<16x64xf32>
    %cst_54 = arith.constant 1.000000e+00 : f32
    %159 = vector.broadcast %cst_54 : f32 to vector<16x64xf32>
    %160 = arith.addf %159, %158 : vector<16x64xf32>
    %161 = arith.mulf %155, %160 : vector<16x64xf32>
    %162 = arith.truncf %161 : vector<16x64xf32> to vector<16x64xbf16>
    %c0_55 = arith.constant 0 : index
    %c0_56 = arith.constant 0 : index
    %c0_57 = arith.constant 0 : index
    %163 = vector.load %arg7[%c0_55, %c0_56, %c0_57] : memref<1x64x32xbf16, #tpu.memory_space<vmem>>, vector<1x64x32xbf16>
    %164 = vector.shape_cast %163 : vector<1x64x32xbf16> to vector<64x32xbf16>
    %cst_58 = arith.constant dense<0.000000e+00> : vector<16x32xf32>
    %165 = tpu.matmul %162, %164, %cst_58 {dimension_numbers = #tpu.dot_dimension_numbers<[1], [0], [0], [1], [0, 0, 1, 1], [], []>} : vector<16x64xbf16>, vector<64x32xbf16>, vector<16x32xf32> -> vector<16x32xf32>
    %166 = vector.broadcast %12 : vector<1x32xf32> to vector<16x32xf32>
    %167 = arith.addf %165, %166 : vector<16x32xf32>
    %168 = arith.addf %167, %147 : vector<16x32xf32>
    %cst_59 = arith.constant dense<0.000000e+00> : vector<16xf32>
    %169 = vector.multi_reduction <add>, %168, %cst_59 [1] : vector<16x32xf32> to vector<16xf32>
    %170 = vector.shape_cast %169 : vector<16xf32> to vector<16x1xf32>
    %cst_60 = arith.constant 3.200000e+01 : f32
    %171 = vector.broadcast %cst_60 : f32 to vector<16x1xf32>
    %172 = arith.divf %170, %171 : vector<16x1xf32>
    %173 = vector.broadcast %172 : vector<16x1xf32> to vector<16x32xf32>
    %174 = arith.subf %168, %173 : vector<16x32xf32>
    %175 = arith.mulf %174, %174 : vector<16x32xf32>
    %cst_61 = arith.constant dense<0.000000e+00> : vector<16xf32>
    %176 = vector.multi_reduction <add>, %175, %cst_61 [1] : vector<16x32xf32> to vector<16xf32>
    %177 = vector.shape_cast %176 : vector<16xf32> to vector<16x1xf32>
    %cst_62 = arith.constant 3.200000e+01 : f32
    %178 = vector.broadcast %cst_62 : f32 to vector<16x1xf32>
    %179 = arith.divf %177, %178 : vector<16x1xf32>
    %180 = vector.broadcast %172 : vector<16x1xf32> to vector<16x32xf32>
    %181 = arith.subf %168, %180 : vector<16x32xf32>
    %cst_63 = arith.constant 9.99999996E-13 : f32
    %182 = vector.broadcast %cst_63 : f32 to vector<16x1xf32>
    %183 = arith.addf %179, %182 : vector<16x1xf32>
    %184 = math.sqrt %183 : vector<16x1xf32>
    %185 = vector.broadcast %184 : vector<16x1xf32> to vector<16x32xf32>
    %186 = arith.divf %181, %185 : vector<16x32xf32>
    %187 = vector.broadcast %13 : vector<1x32xf32> to vector<16x32xf32>
    %188 = arith.mulf %186, %187 : vector<16x32xf32>
    %189 = vector.broadcast %14 : vector<1x32xf32> to vector<16x32xf32>
    %190 = arith.addf %188, %189 : vector<16x32xf32>
    %c0_64 = arith.constant 0 : index
    %c0_65 = arith.constant 0 : index
    %191 = vector.load %arg12[%c0_64, %c0_65] : memref<16x32xf32, #tpu.memory_space<vmem>>, vector<16x32xf32>
    tpu.vector_store %arg12[%c0_64, %c0_65], %190 {strides = array<i32>} : memref<16x32xf32, #tpu.memory_space<vmem>>, vector<16x32xf32>,
    %c1_i32 = arith.constant 1 : i32
    %192 = arith.cmpi eq, %arg0, %c1_i32 : i32
    %193 = arith.extui %192 : i1 to i32
    %c0_i32_66 = arith.constant 0 : i32
    %194 = arith.cmpi ne, %193, %c0_i32_66 : i32
    scf.if %194 {
      %195 = arith.truncf %190 : vector<16x32xf32> to vector<16x32xbf16>
      %c0_67 = arith.constant 0 : index
      %c0_68 = arith.constant 0 : index
      %196 = vector.load %arg9[%c0_67, %c0_68] : memref<32x128xbf16, #tpu.memory_space<vmem>>, vector<32x128xbf16>
      %cst_69 = arith.constant dense<0.000000e+00> : vector<16x128xf32>
      %197 = tpu.matmul %195, %196, %cst_69 {dimension_numbers = #tpu.dot_dimension_numbers<[1], [0], [0], [1], [0, 0, 1, 1], [], []>} : vector<16x32xbf16>, vector<32x128xbf16>, vector<16x128xf32> -> vector<16x128xf32>
      %c0_70 = arith.constant 0 : index
      %c0_71 = arith.constant 0 : index
      %198 = vector.load %arg10[%c0_70, %c0_71] : memref<1x128xf32, #tpu.memory_space<vmem>>, vector<1x128xf32>
      %199 = vector.broadcast %198 : vector<1x128xf32> to vector<16x128xf32>
      %200 = arith.addf %197, %199 : vector<16x128xf32>
      %c0_72 = arith.constant 0 : index
      %c0_73 = arith.constant 0 : index
      %201 = vector.load %arg11[%c0_72, %c0_73] : memref<16x128xf32, #tpu.memory_space<vmem>>, vector<16x128xf32>
      tpu.vector_store %arg11[%c0_72, %c0_73], %200 {strides = array<i32>} : memref<16x128xf32, #tpu.memory_space<vmem>>, vector<16x128xf32>,
    } else {
    }
    return
  }
  func.func @transform_0(%arg0: i32) -> (i32, i32) {
    %c0_i32 = arith.constant 0 : i32
    %c0_i32_0 = arith.constant 0 : i32
    %c0_i32_1 = arith.constant 0 : i32
    return %c0_i32, %c0_i32_0 : i32, i32
  }
  func.func @transform_1(%arg0: i32) -> (i32, i32) {
    %c0_i32 = arith.constant 0 : i32
    %c0_i32_0 = arith.constant 0 : i32
    %c0_i32_1 = arith.constant 0 : i32
    return %c0_i32, %c0_i32_0 : i32, i32
  }
  func.func @transform_2(%arg0: i32) -> (i32, i32) {
    %c0_i32 = arith.constant 0 : i32
    %c0_i32_0 = arith.constant 0 : i32
    %c0_i32_1 = arith.constant 0 : i32
    return %c0_i32, %c0_i32_0 : i32, i32
  }
  func.func @transform_3(%arg0: i32) -> (i32, i32, i32) {
    %c0_i32 = arith.constant 0 : i32
    %c0_i32_0 = arith.constant 0 : i32
    %c0_i32_1 = arith.constant 0 : i32
    return %arg0, %c0_i32, %c0_i32_0 : i32, i32, i32
  }
  func.func @transform_4(%arg0: i32) -> (i32, i32, i32) {
    %c0_i32 = arith.constant 0 : i32
    %c0_i32_0 = arith.constant 0 : i32
    %c0_i32_1 = arith.constant 0 : i32
    return %arg0, %c0_i32, %c0_i32_0 : i32, i32, i32
  }
  func.func @transform_5(%arg0: i32) -> (i32, i32, i32) {
    %c0_i32 = arith.constant 0 : i32
    %c0_i32_0 = arith.constant 0 : i32
    %c0_i32_1 = arith.constant 0 : i32
    return %arg0, %c0_i32, %c0_i32_0 : i32, i32, i32
  }
  func.func @transform_6(%arg0: i32) -> (i32, i32, i32) {
    %c0_i32 = arith.constant 0 : i32
    %c0_i32_0 = arith.constant 0 : i32
    %c0_i32_1 = arith.constant 0 : i32
    return %arg0, %c0_i32, %c0_i32_0 : i32, i32, i32
  }
  func.func @transform_7(%arg0: i32) -> (i32, i32, i32) {
    %c0_i32 = arith.constant 0 : i32
    %c0_i32_0 = arith.constant 0 : i32
    %c0_i32_1 = arith.constant 0 : i32
    return %arg0, %c0_i32, %c0_i32_0 : i32, i32, i32
  }
  func.func @transform_8(%arg0: i32) -> (i32, i32) {
    %c0_i32 = arith.constant 0 : i32
    %c0_i32_0 = arith.constant 0 : i32
    %c0_i32_1 = arith.constant 0 : i32
    return %c0_i32, %c0_i32_0 : i32, i32
  }
  func.func @transform_9(%arg0: i32) -> (i32, i32) {
    %c0_i32 = arith.constant 0 : i32
    %c0_i32_0 = arith.constant 0 : i32
    %c0_i32_1 = arith.constant 0 : i32
    return %c0_i32, %c0_i32_0 : i32, i32
  }
  func.func @transform_10(%arg0: i32) -> (i32, i32) {
    %c0_i32 = arith.constant 0 : i32
    %c0_i32_0 = arith.constant 0 : i32
    %c0_i32_1 = arith.constant 0 : i32
    return %c0_i32, %c0_i32_0 : i32, i32
  }
}

</mosaic_0001>

<bundles_post_ra>
// kernel: qabert_forward.1
= control target key start
LH: loop header
LB: loop body
LE: loop exit
PB: predicated region body
PF: predicated region fallthrough
CT: control target
= control target key end

     0   :  { %s1559_s13 = smov 0   ;;  %s1779_s0 = inlined_call_operand.vmem [shape: f32[16,32], index: 0, kind: input, shape index: {}]   ;;  %s1780_s1 = inlined_call_operand.vmem [shape: f32[2,8], index: 1, kind: input, shape index: {}]   ;;  %s1781_s2 = inlined_call_operand.vmem [shape: f32[2,32], index: 2, kind: input, shape index: {}]   ;;  %s1782_s3 = inlined_call_operand.vmem [shape: bf16[2,32,96], index: 3, kind: input, shape index: {}]   ;;  %s1783_s4 = inlined_call_operand.vmem [shape: bf16[2,32,32], index: 4, kind: input, shape index: {}]   ;;  %s1784_s5 = inlined_call_operand.vmem [shape: bf16[2,32,64], index: 5, kind: input, shape index: {}]   ;;  %s1785_s6 = inlined_call_operand.vmem [shape: bf16[2,64,32], index: 6, kind: input, shape index: {}]   ;;  %s1786_s7 = inlined_call_operand.vmem [shape: f32[2,8,96], index: 7, kind: input, shape index: {}]   ;;  %s1787_s8 = inlined_call_operand.vmem [shape: bf16[32,128], index: 8, kind: input, shape index: {}]   ;;  %s1788_s9 = inlined_call_operand.vmem [shape: f32[1,128], index: 9, kind: input, shape index: {}]   ;;  %s1789_s10 = inlined_call_operand.vmem [shape: f32[16,128], index: 10, kind: output, shape index: {}]  }
   0x1 LB: > { %s1565_s14 = sadd.s32 4294967295, %s1494_s13   ;;  %p1326_p0 = scmp.ge.s32.totalorder %s1494_s13, 1  ;;  %s1494_s13 = sphi %s1559_s13, %s20_s13  }
   0x2   : > { %p346_p1 = scmp.lt.s32.totalorder %s1494_s13, 3 }
   0x4   : > { %p347_p2 = pnand %p1326_p0, %p346_p1 }
   0x5   : > { %p398_p3 = scmp.lt.s32.totalorder (!%p347_p2), %s1565_s14, 1  ;;  %p1336_p4 = scmp.ne.s32.totalorder (!%p347_p2), %s1565_s14, 0 }
   0x6   : > { %350 = sbr.rel (%p347_p2) target bundleno = 2451 (0x993), region = 60 }
   0xb   : > { %s399_s15 = scalar_select %p398_p3, %s1565_s14, 1 }
   0xd   : > { %s1403_s16 = sshll.u32 %s399_s15, 4  ;;  %s1406_s17 = sshll.u32 %s399_s15, 5 }
   0xe   : > { %s1574_s20 = scalar_lea.vmem %s1782_s3, %s1403_s16  ;;  %s1579_s23 = scalar_lea.vmem %s1783_s4, %s1403_s16 }
   0xf   : > { %s1584_s26 = scalar_lea.vmem %s1784_s5, %s1403_s16  ;;  %s1589_s29 = scalar_lea.vmem %s1785_s6, %s1406_s17 }
  0x10   : > { %s1335_s30 = sshll.u32 %s399_s15, 3  ;;  %426 = sbr.rel (%p1336_p4) target bundleno = 319 (0x13f), region = 64 }
  0x11   : > { %s1594_s18 = scalar_lea.vmem %s1786_s7, %s1335_s30 }
  0x15   : > { %v427_v0 = vld [vmem:[%s1779_s0] sm:$0xff]  ;;  %vm431_vm0 = vcmask 261120   ;;  %v428_v2 = vld [vmem:[%s1779_s0 + $0x8] sm:$0xff]  ;;  %v1496_v4 = vmov 32.0  }
  0x16   : > { %v432_v1 = vsel %vm431_vm0, %v427_v0, 0.0  ;;  %v435_v3 = vsel %vm431_vm0, %v428_v2, 0.0  ;;  %1437 = vrcp.f32 %v1496_v4  ;;  %v1435_v56 = vld [vmem:[%s1781_s2] ss:$0 sm:$0xff]  ;;  %v1436_v60 = vld [vmem:[%s1781_s2 + $0x1] ss:$0 sm:$0xff] }
  0x17   : > { %433 = vadd.xlane.f32.xlu0 %v432_v1 }
  0x1c   : > { %v1438_v5 = vpop.eup %1437 }
  0x1d   : > { %v439_v6 = vmul.f32 32.0, %v1438_v5  ;;  %vm443_vm1 = vweird.f32 %v1438_v5 }
  0x1f   : > { %436 = vadd.xlane.f32.xlu0 %v435_v3  ;;  %v440_v7 = vsub.f32 1.0, %v439_v6 }
  0x21   : > { %v441_v8 = vmul.f32 %v1438_v5, %v440_v7 }
  0x23   : > { %v442_v9 = vadd.f32 %v1438_v5, %v441_v8 }
  0x25   : > { %v444_v10 = vsel %vm443_vm1, %v1438_v5, %v442_v9 }
  0x8a   : > { %v434_v11 = vpop.xlane.xlu0 %433 }
  0x8b   : > { %v445_v12 = vmul.f32 %v444_v10, %v434_v11 }
  0x8d   : > { %v447_v13 = vsub.f32 %v427_v0, %v445_v12 }
  0x8f   : > { %v449_v14 = vmul.f32 %v447_v13, %v447_v13 }
  0x91   : > { %v451_v15 = vsel %vm431_vm0, %v449_v14, 0.0 }
  0x92   : > { %452 = vadd.xlane.f32.xlu1 %v451_v15  ;;  %v437_v16 = vpop.xlane.xlu0 %436 }
  0x93   : > { %v446_v17 = vmul.f32 %v444_v10, %v437_v16 }
  0x95   : > { %v1606_v18 = vsub.f32 %v428_v2, %v446_v17 }
  0x97   : > { %v450_v19 = vmul.f32 %v1606_v18, %v1606_v18 }
  0x99   : > { %v454_v20 = vsel %vm431_vm0, %v450_v19, 0.0 }
  0x9a   : > { %455 = vadd.xlane.f32.xlu1 %v454_v20 }
 0x105   : > { %v453_v21 = vpop.xlane.xlu1 %452 }
 0x106   : > { %v457_v22 = vmul.f32 %v453_v21, %v444_v10 }
 0x108   : > { %v459_v23 = vadd.f32 1e-12, %v457_v22 }
 0x10a   : > { %1439 = vrsqrt.f32 %v459_v23  ;;  %vm468_vm2 = vcmp.eq.f32.partialorder %v459_v23, inf  ;;  %v471_v37 = vand.u32 2147483648, %v459_v23  ;;  %vm470_vm3 = vcmp.eq.f32.partialorder %v459_v23, 0.0 }
 0x10d   : > { %v456_v24 = vpop.xlane.xlu1 %455 }
 0x10e   : > { %v458_v25 = vmul.f32 %v456_v24, %v444_v10 }
 0x110   : > { %v1440_v26 = vpop.eup %1439  ;;  %v460_v27 = vadd.f32 1e-12, %v458_v25 }
 0x111   : > { %v462_v28 = vmul.f32 %v1440_v26, %v459_v23 }
 0x112   : > { %1441 = vrsqrt.f32 %v460_v27  ;;  %vm480_vm4 = vcmp.eq.f32.partialorder %v460_v27, inf  ;;  %v483_v45 = vand.u32 2147483648, %v460_v27  ;;  %vm482_vm5 = vcmp.eq.f32.partialorder %v460_v27, 0.0 }
 0x113   : > { %v463_v29 = vmul.f32 %v1440_v26, %v462_v28 }
 0x115   : > { %v464_v30 = vmul.f32 0.5, %v463_v29 }
 0x117   : > { %v465_v31 = vsub.f32 1.5, %v464_v30 }
 0x118   : > { %v1442_v32 = vpop.eup %1441 }
 0x119   : > { %v466_v33 = vmul.f32 %v1440_v26, %v465_v31  ;;  %v474_v34 = vmul.f32 %v1442_v32, %v460_v27 }
 0x11b   : > { %v467_v35 = vmul.f32 %v466_v33, %v459_v23  ;;  %v475_v36 = vmul.f32 %v1442_v32, %v474_v34 }
 0x11d   : > { %v469_v38 = vsel %vm468_vm2, %v459_v23, %v467_v35  ;;  %v476_v39 = vmul.f32 0.5, %v475_v36 }
 0x11e   : > { %v472_v40 = vsel %vm470_vm3, %v471_v37, %v469_v38 }
 0x11f   : > { %1443 = vrcp.f32 %v472_v40  ;;  %v477_v41 = vsub.f32 1.5, %v476_v39  ;;  %v496_v50 = vand.u32 2147483648, %v472_v40  ;;  %v494_v52 = vand.u32 2147483647, %v472_v40 }
 0x120   : > { %vm490_vm7 = vweird.f32 %v472_v40 }
 0x121   : > { %v478_v42 = vmul.f32 %v1442_v32, %v477_v41  ;;  %v497_v54 = vor.u32 1.1754944e-38, %v496_v50  ;;  %vm495_vm9 = vcmp.eq.f32.partialorder %v494_v52, 8.507059e+37 }
 0x123   : > { %v479_v43 = vmul.f32 %v478_v42, %v460_v27 }
 0x125   : > { %v1444_v44 = vpop.eup %1443  ;;  %v481_v47 = vsel %vm480_vm4, %v460_v27, %v479_v43 }
 0x126   : > { %v486_v46 = vmul.f32 %v1444_v44, %v472_v40  ;;  %v484_v48 = vsel %vm482_vm5, %v483_v45, %v481_v47  ;;  %vm491_vm6 = vweird.f32 %v1444_v44 }
 0x127   : > { %1445 = vrcp.f32 %v484_v48  ;;  %vm492_vm8 = vmor %vm490_vm7, %vm491_vm6  ;;  %v511_v0 = vand.u32 2147483648, %v484_v48  ;;  %v509_v2 = vand.u32 2147483647, %v484_v48  ;;  %vm505_vm11 = vweird.f32 %v484_v48 }
 0x128   : > { %v487_v49 = vsub.f32 1.0, %v486_v46 }
 0x129   : > { %v512_v5 = vor.u32 1.1754944e-38, %v511_v0  ;;  %vm510_vm13 = vcmp.eq.f32.partialorder %v509_v2, 8.507059e+37 }
 0x12a   : > { %v488_v51 = vmul.f32 %v1444_v44, %v487_v49 }
 0x12c   : > { %v489_v53 = vadd.f32 %v1444_v44, %v488_v51 }
 0x12d   : > { %v1446_v55 = vpop.eup %1445 }
 0x12e   : > { %v493_v57 = vsel %vm492_vm8, %v1444_v44, %v489_v53  ;;  %v501_v59 = vmul.f32 %v1446_v55, %v484_v48  ;;  %vm506_vm10 = vweird.f32 %v1446_v55 }
 0x12f   : > { %v498_v58 = vsel %vm495_vm9, %v497_v54, %v493_v57  ;;  %vm507_vm12 = vmor %vm505_vm11, %vm506_vm10 }
 0x130   : > { %v499_v61 = vmul.f32 %v498_v58, %v447_v13  ;;  %v502_v62 = vsub.f32 1.0, %v501_v59 }
 0x132   : > { %v516_v63 = vmul.f32 %v1435_v56, %v499_v61  ;;  %v503_v1 = vmul.f32 %v1446_v55, %v502_v62 }
 0x134   : > { %v519_v3 = vadd.f32 %v1436_v60, %v516_v63  ;;  %v504_v4 = vadd.f32 %v1446_v55, %v503_v1 }
 0x136   : > { %521 = vst.msk [vmem:[#allocation2] sm:$0xff] %vm431_vm0, %v519_v3  ;;  %v508_v6 = vsel %vm507_vm12, %v1446_v55, %v504_v4 }
 0x137   : > { %v513_v7 = vsel %vm510_vm13, %v512_v5, %v508_v6 }
 0x138   : > { %v514_v8 = vmul.f32 %v513_v7, %v1606_v18 }
 0x13a   : > { %v517_v9 = vmul.f32 %v1435_v56, %v514_v8 }
 0x13c   : > { %v520_v10 = vadd.f32 %v1436_v60, %v517_v9 }
 0x13e   : > { %522 = vst.msk [vmem:[#allocation2 + $0x8] sm:$0xff] %vm431_vm0, %v520_v10 }
 0x13f PF: > { %v1408_v11 = vld [vmem:[%s1574_s20 + $0x8] sm:$0xff]  ;;  %v1407_v12 = vld [vmem:[%s1574_s20] sm:$0xff]  ;;  %vm544_vm14 = vcmask 261120   ;;  %s1497_s20 = smov 112   ;;  %s1498_s27 = smov 96   ;;  %vm567_vm15 = vcmask 130048  }
 0x140   : > { %554 = vmatpush.bf16.msra.mxu0 %v1408_v11  ;;  %v1622_v13 = vld [vmem:[#allocation2] sm:$0xff]  ;;  %s1499_s28 = smov 80   ;;  %vm590_vm0 = vcmask 64512   ;;  %s1500_s19 = smov 64   ;;  %vm608_vm1 = vcmask 1043456   ;;  %vm688_vm2 = vcmask 261248  }
 0x141   : > { %v1630_v16 = vld [vmem:[%s1594_s18] sm:$0xff]  ;;  %s1501_s21 = smov 48   ;;  %s1502_s16 = smov 16  }
 0x142   : > { %v531_v17 = vperm.slane %v1630_v16, 0  ;;  %v1448_v34 = vld [vmem:[%s1780_s1 + $0x1] ss:$0 sm:$0xff]  ;;  %v1447_v38 = vld [vmem:[%s1780_s1] ss:$0 sm:$0xff]  ;;  %p1391_p5 = scmp.ne.s32.totalorder %s1565_s14, 1 }
 0x144   : > { %555 = vmatpush.bf16.msra.mxu0 %v1407_v12 }
 0x145   : > { %v1624_v14 = vld [vmem:[#allocation2 + $0x8] sm:$0xff] }
 0x146   : > { %v525_v15 = vpack.c.bf16 %v1624_v14, %v1622_v13 }
 0x148   : > { %1345 = vmatmul.msk.bf16.vlgmr.msra.gmra.mxu0 %vm544_vm14, %v525_v15 }
 0x1c5   : > { %v557_v18 = vpop.f32.mrf.mxu0 }
 0x1c6   : > { %v558_v19 = vadd.f32 %v557_v18, %v531_v17 }
 0x1c8   : > { %v1633_v20 = vpack.c.bf16 %v558_v19, %v558_v19 }
 0x1ca   : > { %626 = vrot.lane.b32.xlu1 %v1633_v20, %s1497_s20  ;;  %565 = vrot.lane.b32.xlu0 %v1633_v20, %s1498_s27 }
 0x1cd   : > { %v559_v21 = vpop.f32.mrf.mxu0 }
 0x1ce   : > { %v560_v22 = vadd.f32 %v559_v21, %v531_v17 }
 0x1d0   : > { %v691_v23 = vpack.c.bf16 %v560_v22, %v560_v22 }
 0x1d2   : > { %751 = vrot.lane.b32.xlu2 %v691_v23, %s1497_s20  ;;  %753 = vrot.lane.b32.xlu1 %v691_v23, %s1499_s28 }
 0x1d3   : > { %628 = vrot.lane.b32.xlu0 %v1633_v20, %s1499_s28 }
 0x1da   : > { %693 = vrot.lane.b32.xlu2 %v691_v23, %s1498_s27 }
 0x22c   : > { %v752_v24 = vpop.permute.xlu2 %751 }
 0x234   : > { %v694_v25 = vpop.permute.xlu2 %693 }
 0x235   : > { %v699_v26 = vsel %vm567_vm15, %v694_v25, 0 }
 0x236   : > { %708 = vmatpush.bf16.xpose.msrb.mxu0 %v699_v26 }
 0x23c   : > { %v627_v27 = vpop.permute.xlu1 %626  ;;  %v566_v28 = vpop.permute.xlu0 %565 }
 0x23d   : > { %1350 = vmatmul.msk.bf16.vlgmr.msrb.gmra.mxu0 %vm567_vm15, %v691_v23  ;;  %v572_v29 = vsel %vm567_vm15, %v566_v28, 0 }
 0x23e   : > { %581 = vmatpush.bf16.xpose.msra.mxu1 %v572_v29 }
 0x244   : > { %v754_v30 = vpop.permute.xlu1 %753 }
 0x245   : > { %v629_v31 = vpop.permute.xlu0 %628  ;;  %1346 = vmatmul.msk.bf16.vlgmr.msra.gmra.mxu1 %vm567_vm15, %v1633_v20  ;;  %v759_v32 = vsel %vm567_vm15, %v754_v30, 0 }
 0x246   : > { %v634_v33 = vsel %vm567_vm15, %v629_v31, 0 }
 0x247   : > { %643 = vmatpush.bf16.xpose.msra.mxu3 %v634_v33 }
 0x24e   : > { %1348 = vmatmul.msk.bf16.vlgmr.msra.gmra.mxu3 %vm567_vm15, %v627_v27 }
 0x24f   : > { %768 = vmatpush.bf16.xpose.msrb.mxu3 %v759_v32 }
 0x25e   : > { %1352 = vmatmul.msk.bf16.vlgmr.msrb.gmra.mxu3 %vm567_vm15, %v752_v24 }
 0x2ba   : > { %v710_v35 = vpop.f32.mrf.mxu0 }
 0x2bb   : > { %v714_v36 = vmul.f32 0.25, %v710_v35 }
 0x2bd   : > { %v1650_v37 = vadd.f32 %v1448_v34, %v714_v36 }
 0x2bf   : > { %v717_v7 = vsel %vm590_vm0, %v1650_v37, -inf }
 0x2c2   : > { %v583_v39 = vpop.f32.mrf.mxu1  ;;  %v712_v40 = vpop.f32.mrf.mxu0 }
 0x2c3   : > { %v587_v41 = vmul.f32 0.25, %v583_v39 }
 0x2c5   : > { %v589_v42 = vadd.f32 %v1447_v38, %v587_v41 }
 0x2c7   : > { %v591_v43 = vsel %vm590_vm0, %v589_v42, -inf }
 0x2c8   : > { %592 = vmax.xlane.f32.xlu0 %v591_v43 }
 0x2ca   : > { %v585_v44 = vpop.f32.mrf.mxu1 }
 0x2d1   : > { %v645_v45 = vpop.f32.mrf.mxu3 }
 0x2d2   : > { %v649_v46 = vmul.f32 0.25, %v645_v45  ;;  %v1410_v45 = vld [vmem:[%s1579_s23 + $0x8] sm:$0xff] }
 0x2d3   : > { %843 = vmatpush.bf16.msra.mxu0 %v1410_v45 }
 0x2d4   : > { %v650_v47 = vadd.f32 %v1447_v38, %v649_v46 }
 0x2d6   : > { %v651_v48 = vsel %vm590_vm0, %v650_v47, -inf }
 0x2d7   : > { %652 = vmax.xlane.f32.xlu1 %v651_v48 }
 0x2d9   : > { %v647_v49 = vpop.f32.mrf.mxu3 }
 0x2dc   : > { %603 = vrot.lane.b32.xlu0 %v1633_v20, %s1500_s19 }
 0x2e1   : > { %v770_v50 = vpop.f32.mrf.mxu3 }
 0x2e2   : > { %v774_v51 = vmul.f32 0.25, %v770_v50 }
 0x2e4   : > { %788 = vrot.lane.b32.xlu0 %v691_v23, %s1501_s21  ;;  %v775_v52 = vadd.f32 %v1448_v34, %v774_v51 }
 0x2e6   : > { %v776_v53 = vsel %vm590_vm0, %v775_v52, -inf }
 0x2e7   : > { %777 = vmax.xlane.f32.xlu2 %v776_v53 }
 0x2e9   : > { %v772_v54 = vpop.f32.mrf.mxu3 }
 0x2ea   : > { %v821_v54 = vperm.slane %v1630_v16, 1 }
 0x2ec   : > { %729 = vrot.lane.b32.xlu0 %v691_v23, %s1500_s19 }
 0x33b   : > { %v593_v55 = vpop.xlane.xlu0 %592 }
 0x33c   : > { %v594_v56 = vsub.f32 %v589_v42, %v593_v55 }
 0x33e   : > { %v595_v57 = vmul.f32 1.442695, %v594_v56 }
 0x340   : > { %1449 = vpow2.f32 %v595_v57 }
 0x346   : > { %v1450_v58 = vpop.eup %1449 }
 0x347   : > { %v597_v59 = vsel %vm590_vm0, %v1450_v58, 0.0 }
 0x348   : > { %598 = vadd.xlane.f32.xlu2 %v597_v59 }
 0x34a   : > { %v653_v60 = vpop.xlane.xlu1 %652 }
 0x34b   : > { %v654_v61 = vsub.f32 %v650_v47, %v653_v60  ;;  %v1409_v47 = vld [vmem:[%s1579_s23] sm:$0xff] }
 0x34c   : > { %844 = vmatpush.bf16.msra.mxu0 %v1409_v47 }
 0x34d   : > { %v655_v62 = vmul.f32 1.442695, %v654_v61 }
 0x34e   : > { %v604_v63 = vpop.permute.xlu0 %603 }
 0x34f   : > { %1451 = vpow2.f32 %v655_v62  ;;  %v610_v0 = vsel %vm608_vm1, %v604_v63, 0  ;;  %v1503_v63 = vmov 32.0  }
 0x350   : > { %619 = vmatpush.bf16.msra.mxu2 %v610_v0 }
 0x355   : > { %v1452_v1 = vpop.eup %1451 }
 0x356   : > { %v657_v2 = vsel %vm590_vm0, %v1452_v1, 0.0  ;;  %v789_v3 = vpop.permute.xlu0 %788 }
 0x357   : > { %658 = vadd.xlane.f32.xlu1 %v657_v2  ;;  %v794_v22 = vsel %vm608_vm1, %v789_v3, 0 }
 0x35a   : > { %v778_v4 = vpop.xlane.xlu2 %777 }
 0x35b   : > { %v779_v5 = vsub.f32 %v775_v52, %v778_v4 }
 0x35d   : > { %v780_v6 = vmul.f32 1.442695, %v779_v5 }
 0x35e   : > { %v730_v8 = vpop.permute.xlu0 %729 }
 0x35f   : > { %1453 = vpow2.f32 %v780_v6  ;;  %718 = vmax.xlane.f32.xlu1 %v717_v7  ;;  %v735_v9 = vsel %vm608_vm1, %v730_v8, 0 }
 0x360   : > { %663 = vrot.lane.b32.xlu2 %v1633_v20, %s1501_s21  ;;  %744 = vmatpush.bf16.msrb.mxu1 %v735_v9 }
 0x365   : > { %v1454_v10 = vpop.eup %1453 }
 0x366   : > { %v782_v11 = vsel %vm590_vm0, %v1454_v10, 0.0 }
 0x367   : > { %783 = vadd.xlane.f32.xlu1 %v782_v11 }
 0x3bb   : > { %v599_v12 = vpop.xlane.xlu2 %598 }
 0x3bc   : > { %1455 = vrcp.f32 %v599_v12 }
 0x3c2   : > { %v1456_v15 = vpop.eup %1455 }
 0x3c3   : > { %v664_v17 = vpop.permute.xlu2 %663  ;;  %v601_v18 = vmul.f32 %v1456_v15, %v1450_v58 }
 0x3c4   : > { %v669_v19 = vsel %vm608_vm1, %v664_v17, 0 }
 0x3c5   : > { %678 = vmatpush.bf16.msrb.mxu2 %v669_v19  ;;  %v602_v21 = vpack.c.bf16 %v601_v18, %v601_v18  ;;  %v1412_v19 = vld [vmem:[%s1584_s26 + $0x8] sm:$0xff] }
 0x3c6   : > { %969 = vmatpush.bf16.msra.mxu1 %v1412_v19 }
 0x3c7   : > { %1347 = vmatmul.msk.bf16.vlgmr.msra.gmra.mxu2 %vm590_vm0, %v602_v21 }
 0x3c9   : > { %803 = vmatpush.bf16.msra.mxu2 %v794_v22  ;;  %v1411_v22 = vld [vmem:[%s1584_s26] sm:$0xff] }
 0x3ca   : > { %v659_v20 = vpop.xlane.xlu1 %658  ;;  %970 = vmatpush.bf16.msra.mxu1 %v1411_v22 }
 0x3cb   : > { %1457 = vrcp.f32 %v659_v20 }
 0x3d1   : > { %v1458_v23 = vpop.eup %1457 }
 0x3d2   : > { %v661_v24 = vmul.f32 %v1458_v23, %v1452_v1  ;;  %v719_v25 = vpop.xlane.xlu1 %718 }
 0x3d3   : > { %v720_v26 = vsub.f32 %v1650_v37, %v719_v25 }
 0x3d4   : > { %v662_v28 = vpack.c.bf16 %v661_v24, %v661_v24 }
 0x3d5   : > { %v721_v27 = vmul.f32 1.442695, %v720_v26 }
 0x3d7   : > { %1459 = vpow2.f32 %v721_v27  ;;  %1349 = vmatmul.msk.bf16.vlgmr.msrb.gmra.mxu2 %vm590_vm0, %v662_v28 }
 0x3da   : > { %v784_v29 = vpop.xlane.xlu1 %783 }
 0x3db   : > { %1461 = vrcp.f32 %v784_v29 }
 0x3dd   : > { %v1460_v30 = vpop.eup %1459 }
 0x3de   : > { %v723_v31 = vsel %vm590_vm0, %v1460_v30, 0.0 }
 0x3df   : > { %724 = vadd.xlane.f32.xlu1 %v723_v31 }
 0x3e1   : > { %v1462_v32 = vpop.eup %1461 }
 0x3e2   : > { %v786_v33 = vmul.f32 %v1462_v32, %v1454_v10 }
 0x3e4   : > { %v787_v34 = vpack.c.bf16 %v786_v33, %v786_v33 }
 0x3e7   : > { %1353 = vmatmul.msk.bf16.vlgmr.msra.gmra.mxu2 %vm590_vm0, %v787_v34 }
 0x44a   : > { %v621_v35 = vpop.f32.mrf.mxu2 }
 0x44b   : > { %625 = vst.msk [vmem:[#allocation3] sm:$0xff] %vm567_vm15, %v621_v35 }
 0x452   : > { %v725_v36 = vpop.xlane.xlu1 %724  ;;  %v623_v37 = vpop.f32.mrf.mxu2 }
 0x453   : > { %1463 = vrcp.f32 %v725_v36 }
 0x454   : > { %1465 = vrcp.f32 %v1503_v63  ;;  %v936_v63 = vperm.slane %v1630_v16, 2 }
 0x459   : > { %v1464_v38 = vpop.eup %1463 }
 0x45a   : > { %v727_v39 = vmul.f32 %v1464_v38, %v1460_v30  ;;  %v680_v40 = vpop.f32.mrf.mxu2  ;;  %v1466_v0 = vpop.eup %1465 }
 0x45b   : > { %685 = vrot.lane.b32.xlu2 %v680_v40, %s1502_s16  ;;  %v860_v1 = vmul.f32 32.0, %v1466_v0  ;;  %vm864_vm3 = vweird.f32 %v1466_v0 }
 0x45c   : > { %v728_v41 = vpack.c.bf16 %v727_v39, %v727_v39 }
 0x45d   : > { %v861_v2 = vsub.f32 1.0, %v860_v1 }
 0x45e   : > { %1351 = vmatmul.msk.bf16.vlgmr.msrb.gmra.mxu1 %vm590_vm0, %v728_v41 }
 0x45f   : > { %v862_v3 = vmul.f32 %v1466_v0, %v861_v2 }
 0x461   : > { %v863_v4 = vadd.f32 %v1466_v0, %v862_v3 }
 0x462   : > { %v682_v42 = vpop.f32.mrf.mxu2 }
 0x46a   : > { %v805_v43 = vpop.f32.mrf.mxu2 }
 0x46b   : > { %810 = vrot.lane.b32.xlu1 %v805_v43, %s1502_s16 }
 0x472   : > { %v807_v44 = vpop.f32.mrf.mxu2 }
 0x4b5   : > { %v686_v46 = vpop.permute.xlu2 %685 }
 0x4b6   : > { %689 = vst.msk [vmem:[#allocation3] sm:$0xff] %vm688_vm2, %v686_v46 }
 0x4bd   : > { %v814_v51 = vld [vmem:[#allocation3] sm:$0xff] }
 0x4db   : > { %v746_v48 = vpop.f32.mrf.mxu1 }
 0x4dc   : > { %750 = vst.msk [vmem:[#allocation3 + $0x8] sm:$0xff] %vm567_vm15, %v746_v48 }
 0x4dd   : > { %v811_v49 = vpop.permute.xlu1 %810 }
 0x4de   : > { %813 = vst.msk [vmem:[#allocation3 + $0x8] sm:$0xff] %vm688_vm2, %v811_v49 }
 0x4e3   : > { %v748_v50 = vpop.f32.mrf.mxu1 }
 0x4e5   : > { %v815_v52 = vld [vmem:[#allocation3 + $0x8] sm:$0xff] }
 0x4e6   : > { %v816_v53 = vpack.c.bf16 %v815_v52, %v814_v51 }
 0x4e8   : > { %1362 = vmatmul.msk.bf16.vlgmr.msra.gmra.mxu0 %vm544_vm14, %v816_v53 }
 0x565   : > { %v846_v55 = vpop.f32.mrf.mxu0 }
 0x566   : > { %v847_v56 = vadd.f32 %v846_v55, %v821_v54 }
 0x568   : > { %v851_v57 = vadd.f32 %v847_v56, %v1622_v13  ;;  %v1687_v13 = vsel %vm864_vm3, %v1466_v0, %v863_v4 }
 0x56a   : > { %v853_v58 = vsel %vm544_vm14, %v851_v57, 0.0 }
 0x56b   : > { %854 = vadd.xlane.f32.xlu0 %v853_v58 }
 0x56d   : > { %v848_v59 = vpop.f32.mrf.mxu0 }
 0x56e   : > { %v849_v60 = vadd.f32 %v848_v59, %v821_v54 }
 0x570   : > { %v852_v61 = vadd.f32 %v849_v60, %v1624_v14 }
 0x572   : > { %v856_v62 = vsel %vm544_vm14, %v852_v61, 0.0 }
 0x573   : > { %857 = vadd.xlane.f32.xlu2 %v856_v62 }
 0x5de   : > { %v855_v5 = vpop.xlane.xlu0 %854 }
 0x5df   : > { %v866_v6 = vmul.f32 %v1687_v13, %v855_v5  ;;  %v939_v5 = vperm.slane %v1630_v16, 3 }
 0x5e1   : > { %v1690_v7 = vsub.f32 %v851_v57, %v866_v6 }
 0x5e3   : > { %v870_v14 = vmul.f32 %v1690_v7, %v1690_v7 }
 0x5e5   : > { %v872_v8 = vsel %vm544_vm14, %v870_v14, 0.0 }
 0x5e6   : > { %v858_v9 = vpop.xlane.xlu2 %857  ;;  %873 = vadd.xlane.f32.xlu1 %v872_v8 }
 0x5e7   : > { %v867_v10 = vmul.f32 %v1687_v13, %v858_v9  ;;  %v947_v9 = vperm.slane %v1630_v16, 4 }
 0x5e9   : > { %v1696_v11 = vsub.f32 %v852_v61, %v867_v10 }
 0x5eb   : > { %v871_v12 = vmul.f32 %v1696_v11, %v1696_v11 }
 0x5ed   : > { %v875_v15 = vsel %vm544_vm14, %v871_v12, 0.0 }
 0x5ee   : > { %876 = vadd.xlane.f32.xlu0 %v875_v15 }
 0x659   : > { %v874_v17 = vpop.xlane.xlu1 %873 }
 0x65a   : > { %v878_v18 = vmul.f32 %v874_v17, %v1687_v13 }
 0x65c   : > { %v880_v21 = vadd.f32 1e-12, %v878_v18 }
 0x65e   : > { %1467 = vrsqrt.f32 %v880_v21  ;;  %vm889_vm4 = vcmp.eq.f32.partialorder %v880_v21, inf  ;;  %v892_v35 = vand.u32 2147483648, %v880_v21  ;;  %vm891_vm5 = vcmp.eq.f32.partialorder %v880_v21, 0.0 }
 0x661   : > { %v877_v20 = vpop.xlane.xlu0 %876 }
 0x662   : > { %v879_v23 = vmul.f32 %v877_v20, %v1687_v13 }
 0x664   : > { %v1468_v24 = vpop.eup %1467  ;;  %v881_v25 = vadd.f32 1e-12, %v879_v23 }
 0x665   : > { %v883_v26 = vmul.f32 %v1468_v24, %v880_v21 }
 0x666   : > { %1469 = vrsqrt.f32 %v881_v25  ;;  %vm901_vm6 = vcmp.eq.f32.partialorder %v881_v25, inf  ;;  %v904_v42 = vand.u32 2147483648, %v881_v25  ;;  %vm903_vm7 = vcmp.eq.f32.partialorder %v881_v25, 0.0 }
 0x667   : > { %v884_v27 = vmul.f32 %v1468_v24, %v883_v26 }
 0x669   : > { %v885_v28 = vmul.f32 0.5, %v884_v27 }
 0x66b   : > { %v886_v29 = vsub.f32 1.5, %v885_v28 }
 0x66c   : > { %v1470_v30 = vpop.eup %1469 }
 0x66d   : > { %v887_v31 = vmul.f32 %v1468_v24, %v886_v29  ;;  %v895_v32 = vmul.f32 %v1470_v30, %v881_v25 }
 0x66f   : > { %v888_v33 = vmul.f32 %v887_v31, %v880_v21  ;;  %v896_v34 = vmul.f32 %v1470_v30, %v895_v32  ;;  %v1416_v31 = vld [vmem:[%s1589_s29 + $0x18] sm:$0xff] }
 0x670   : > { %1107 = vmatpush.bf16.msra.mxu3 %v1416_v31 }
 0x671   : > { %v890_v36 = vsel %vm889_vm4, %v880_v21, %v888_v33  ;;  %v897_v37 = vmul.f32 0.5, %v896_v34 }
 0x672   : > { %v893_v38 = vsel %vm891_vm5, %v892_v35, %v890_v36 }
 0x673   : > { %1471 = vrcp.f32 %v893_v38  ;;  %v898_v39 = vsub.f32 1.5, %v897_v37  ;;  %v917_v49 = vand.u32 2147483648, %v893_v38  ;;  %vm911_vm9 = vweird.f32 %v893_v38 }
 0x674   : > { %v915_v51 = vand.u32 2147483647, %v893_v38 }
 0x675   : > { %v899_v40 = vmul.f32 %v1470_v30, %v898_v39  ;;  %v918_v55 = vor.u32 1.1754944e-38, %v917_v49  ;;  %v1415_v39 = vld [vmem:[%s1589_s29 + $0x10] sm:$0xff] }
 0x676   : > { %vm916_vm11 = vcmp.eq.f32.partialorder %v915_v51, 8.507059e+37  ;;  %1108 = vmatpush.bf16.msra.mxu3 %v1415_v39 }
 0x677   : > { %v900_v41 = vmul.f32 %v899_v40, %v881_v25 }
 0x679   : > { %v1472_v43 = vpop.eup %1471  ;;  %v902_v44 = vsel %vm901_vm6, %v881_v25, %v900_v41 }
 0x67a   : > { %v905_v45 = vsel %vm903_vm7, %v904_v42, %v902_v44  ;;  %v907_v46 = vmul.f32 %v1472_v43, %v893_v38  ;;  %vm912_vm8 = vweird.f32 %v1472_v43 }
 0x67b   : > { %1473 = vrcp.f32 %v905_v45  ;;  %vm913_vm10 = vmor %vm911_vm9, %vm912_vm8  ;;  %v932_v58 = vand.u32 2147483648, %v905_v45  ;;  %v930_v60 = vand.u32 2147483647, %v905_v45  ;;  %vm926_vm13 = vweird.f32 %v905_v45 }
 0x67c   : > { %v908_v47 = vsub.f32 1.0, %v907_v46  ;;  %vm1099_vm9 = vcmask 523264  }
 0x67d   : > { %v933_v0 = vor.u32 1.1754944e-38, %v932_v58  ;;  %vm931_vm0 = vcmp.eq.f32.partialorder %v930_v60, 8.507059e+37 }
 0x67e   : > { %v909_v48 = vmul.f32 %v1472_v43, %v908_v47  ;;  %v1414_v47 = vld [vmem:[%s1589_s29 + $0x8] sm:$0xff] }
 0x67f   : > { %1109 = vmatpush.bf16.msra.mxu3 %v1414_v47 }
 0x680   : > { %v910_v50 = vadd.f32 %v1472_v43, %v909_v48 }
 0x681   : > { %v1474_v52 = vpop.eup %1473 }
 0x682   : > { %v914_v53 = vsel %vm913_vm10, %v1472_v43, %v910_v50  ;;  %v922_v54 = vmul.f32 %v1474_v52, %v905_v45  ;;  %vm927_vm12 = vweird.f32 %v1474_v52 }
 0x683   : > { %v919_v57 = vsel %vm916_vm11, %v918_v55, %v914_v53  ;;  %vm928_vm15 = vmor %vm926_vm13, %vm927_vm12  ;;  %v1413_v53 = vld [vmem:[%s1589_s29] sm:$0xff] }
 0x684   : > { %v923_v56 = vsub.f32 1.0, %v922_v54  ;;  %v920_v61 = vmul.f32 %v919_v57, %v1690_v7  ;;  %1110 = vmatpush.bf16.msra.mxu3 %v1413_v53 }
 0x686   : > { %v924_v59 = vmul.f32 %v1474_v52, %v923_v56  ;;  %v937_v4 = vmul.f32 %v936_v63, %v920_v61 }
 0x688   : > { %v925_v62 = vadd.f32 %v1474_v52, %v924_v59  ;;  %v1709_v14 = vadd.f32 %v939_v5, %v937_v4 }
 0x68a   : > { %v929_v1 = vsel %vm928_vm15, %v1474_v52, %v925_v62 }
 0x68b   : > { %v934_v2 = vsel %vm931_vm0, %v933_v0, %v929_v1 }
 0x68c   : > { %v935_v3 = vmul.f32 %v934_v2, %v1696_v11 }
 0x68e   : > { %v938_v6 = vmul.f32 %v936_v63, %v935_v3 }
 0x690   : > { %v1711_v8 = vadd.f32 %v939_v5, %v938_v6 }
 0x692   : > { %v942_v7 = vpack.c.bf16 %v1711_v8, %v1709_v14 }
 0x694   : > { %1371 = vmatmul.msk.bf16.vlgmr.msra.gmra.mxu1 %vm544_vm14, %v942_v7 }
 0x711   : > { %v972_v10 = vpop.f32.mrf.mxu1 }
 0x712   : > { %v1717_v12 = vadd.f32 %v972_v10, %v947_v9 }
 0x714   : > { %v1720_v11 = vmul.f32 0.70710677, %v1717_v12 }
 0x716   : > { %v981_v15 = vmul.f32 %v1720_v11, %v1720_v11 }
 0x718   : > { %v982_v17 = vmin.f32 %v981_v15, 16.0 }
 0x719   : > { %v974_v18 = vpop.f32.mrf.mxu1 }
 0x71a   : > { %v983_v19 = vmul.f32 2.1237322e-06, %v982_v17  ;;  %v994_v21 = vmul.f32 3.8918573e-05, %v982_v17  ;;  %v1724_v22 = vadd.f32 %v974_v18, %v947_v9 }
 0x71c   : > { %v984_v20 = vadd.f32 0.00028619796, %v983_v19  ;;  %v995_v23 = vadd.f32 0.001143296, %v994_v21  ;;  %v1727_v24 = vmul.f32 0.70710677, %v1724_v22 }
 0x71e   : > { %v996_v25 = vmul.f32 %v995_v23, %v982_v17  ;;  %v1021_v26 = vmul.f32 %v1727_v24, %v1727_v24  ;;  %v985_v27 = vmul.f32 %v984_v20, %v982_v17 }
 0x720   : > { %v997_v28 = vadd.f32 0.014752088, %v996_v25  ;;  %v1022_v29 = vmin.f32 %v1021_v26, 16.0  ;;  %v986_v34 = vadd.f32 0.0036580483, %v985_v27 }
 0x722   : > { %v998_v30 = vmul.f32 %v997_v28, %v982_v17  ;;  %v1023_v32 = vmul.f32 2.1237322e-06, %v1022_v29  ;;  %v1034_v33 = vmul.f32 3.8918573e-05, %v1022_v29  ;;  %v987_v42 = vmul.f32 %v986_v34, %v982_v17 }
 0x724   : > { %v999_v35 = vadd.f32 0.112945676, %v998_v30  ;;  %v1024_v36 = vadd.f32 0.00028619796, %v1023_v32  ;;  %v1035_v37 = vadd.f32 0.001143296, %v1034_v33 }
 0x725   : > { %v988_v49 = vadd.f32 0.05243302, %v987_v42 }
 0x726   : > { %v1000_v38 = vmul.f32 %v999_v35, %v982_v17  ;;  %v1025_v40 = vmul.f32 %v1024_v36, %v1022_v29  ;;  %v1036_v41 = vmul.f32 %v1035_v37, %v1022_v29  ;;  %v977_v37 = vmul.f32 0.5, %v1717_v12 }
 0x727   : > { %v989_v55 = vmul.f32 %v988_v49, %v982_v17 }
 0x728   : > { %v1001_v43 = vadd.f32 0.4994258, %v1000_v38  ;;  %v1026_v44 = vadd.f32 0.0036580483, %v1025_v40  ;;  %v1037_v45 = vadd.f32 0.014752088, %v1036_v41 }
 0x729   : > { %v990_v60 = vadd.f32 0.18741608, %v989_v55  ;;  %v978_v38 = vmul.f32 0.5, %v1724_v22 }
 0x72a   : > { %v1002_v46 = vmul.f32 %v1001_v43, %v982_v17  ;;  %v1038_v48 = vmul.f32 %v1037_v45, %v1022_v29  ;;  %v1027_v51 = vmul.f32 %v1026_v44, %v1022_v29  ;;  %v1074_v43 = vperm.slane %v1630_v16, 5 }
 0x72b   : > { %v991_v1 = vmul.f32 %v990_v60, %v982_v17 }
 0x72c   : > { %v1003_v50 = vadd.f32 1.0, %v1002_v46  ;;  %v1039_v52 = vadd.f32 0.112945676, %v1038_v48  ;;  %v1028_v56 = vadd.f32 0.05243302, %v1027_v51 }
 0x72d   : > { %v992_v7 = vadd.f32 1.1283791, %v991_v1 }
 0x72e   : > { %1475 = vrcp.f32 %v1003_v50  ;;  %v1040_v54 = vmul.f32 %v1039_v52, %v1022_v29  ;;  %v1029_v62 = vmul.f32 %v1028_v56, %v1022_v29  ;;  %v1015_v3 = vand.u32 2147483648, %v1003_v50 }
 0x72f   : > { %v1013_v5 = vand.u32 2147483647, %v1003_v50  ;;  %vm1009_vm2 = vweird.f32 %v1003_v50  ;;  %v993_v20 = vmul.f32 %v992_v7, %v1720_v11 }
 0x730   : > { %v1041_v57 = vadd.f32 0.4994258, %v1040_v54  ;;  %v1030_v4 = vadd.f32 0.18741608, %v1029_v62  ;;  %v1016_v15 = vor.u32 1.1754944e-38, %v1015_v3 }
 0x731   : > { %vm1014_vm4 = vcmp.eq.f32.partialorder %v1013_v5, 8.507059e+37 }
 0x732   : > { %v1042_v58 = vmul.f32 %v1041_v57, %v1022_v29  ;;  %v1031_v18 = vmul.f32 %v1030_v4, %v1022_v29 }
 0x734   : > { %v1476_v59 = vpop.eup %1475  ;;  %v1043_v63 = vadd.f32 1.0, %v1042_v58  ;;  %v1032_v17 = vadd.f32 1.1283791, %v1031_v18 }
 0x735   : > { %v1005_v61 = vmul.f32 %v1476_v59, %v1003_v50  ;;  %vm1010_vm1 = vweird.f32 %v1476_v59 }
 0x736   : > { %1477 = vrcp.f32 %v1043_v63  ;;  %vm1011_vm3 = vmor %vm1009_vm2, %vm1010_vm1  ;;  %v1055_v25 = vand.u32 2147483648, %v1043_v63  ;;  %v1053_v28 = vand.u32 2147483647, %v1043_v63  ;;  %vm1049_vm6 = vweird.f32 %v1043_v63 }
 0x737   : > { %v1006_v0 = vsub.f32 1.0, %v1005_v61  ;;  %v1033_v33 = vmul.f32 %v1032_v17, %v1727_v24 }
 0x738   : > { %v1056_v31 = vor.u32 1.1754944e-38, %v1055_v25  ;;  %vm1054_vm8 = vcmp.eq.f32.partialorder %v1053_v28, 8.507059e+37 }
 0x739   : > { %v1007_v2 = vmul.f32 %v1476_v59, %v1006_v0 }
 0x73b   : > { %v1008_v6 = vadd.f32 %v1476_v59, %v1007_v2 }
 0x73c   : > { %v1478_v9 = vpop.eup %1477 }
 0x73d   : > { %v1012_v10 = vsel %vm1011_vm3, %v1476_v59, %v1008_v6  ;;  %v1045_v19 = vmul.f32 %v1478_v9, %v1043_v63  ;;  %vm1050_vm5 = vweird.f32 %v1478_v9 }
 0x73e   : > { %v1017_v21 = vsel %vm1014_vm4, %v1016_v15, %v1012_v10  ;;  %vm1051_vm7 = vmor %vm1049_vm6, %vm1050_vm5 }
 0x73f   : > { %v1046_v23 = vsub.f32 1.0, %v1045_v19  ;;  %v1018_v26 = vmul.f32 %v1017_v21, %v993_v20 }
 0x741   : > { %v1047_v27 = vmul.f32 %v1478_v9, %v1046_v23  ;;  %v1372_v32 = vclamps-f32 %v1018_v26, 1.0 }
 0x743   : > { %v1048_v30 = vadd.f32 %v1478_v9, %v1047_v27  ;;  %v1061_v36 = vadd.f32 1.0, %v1372_v32 }
 0x745   : > { %v1052_v29 = vsel %vm1051_vm7, %v1478_v9, %v1048_v30  ;;  %v1063_v40 = vmul.f32 %v1061_v36, %v977_v37 }
 0x746   : > { %v1057_v34 = vsel %vm1054_vm8, %v1056_v31, %v1052_v29 }
 0x747   : > { %v1058_v35 = vmul.f32 %v1057_v34, %v1033_v33 }
 0x749   : > { %v1373_v11 = vclamps-f32 %v1058_v35, 1.0  ;;  %v1195_v35 = vperm.slane %v1630_v16, 6 }
 0x74b   : > { %v1062_v39 = vadd.f32 1.0, %v1373_v11 }
 0x74d   : > { %v1064_v41 = vmul.f32 %v1062_v39, %v978_v38  ;;  %v1198_v38 = vperm.slane %v1630_v16, 7 }
 0x74f   : > { %v1065_v42 = vpack.c.bf16 %v1064_v41, %v1063_v40 }
 0x751   : > { %1390 = vmatmul.msk.bf16.vlgmr.msra.gmra.mxu3 %vm1099_vm9, %v1065_v42 }
 0x7d4   : > { %v1112_v44 = vpop.f32.mrf.mxu3 }
 0x7d5   : > { %v1113_v24 = vadd.f32 %v1112_v44, %v1074_v43 }
 0x7d7   : > { %v1117_v45 = vadd.f32 %v1113_v24, %v1709_v14 }
 0x7d9   : > { %v1119_v46 = vsel %vm544_vm14, %v1117_v45, 0.0 }
 0x7da   : > { %1120 = vadd.xlane.f32.xlu2 %v1119_v46 }
 0x7dc   : > { %v1114_v47 = vpop.f32.mrf.mxu3 }
 0x7dd   : > { %v1115_v48 = vadd.f32 %v1114_v47, %v1074_v43 }
 0x7df   : > { %v1118_v12 = vadd.f32 %v1115_v48, %v1711_v8 }
 0x7e1   : > { %v1122_v22 = vsel %vm544_vm14, %v1118_v12, 0.0 }
 0x7e2   : > { %1123 = vadd.xlane.f32.xlu0 %v1122_v22 }
 0x84d   : > { %v1121_v49 = vpop.xlane.xlu2 %1120 }
 0x84e   : > { %v1125_v50 = vmul.f32 %v1121_v49, %v1687_v13 }
 0x850   : > { %v1127_v51 = vsub.f32 %v1117_v45, %v1125_v50 }
 0x852   : > { %v1129_v52 = vmul.f32 %v1127_v51, %v1127_v51 }
 0x854   : > { %v1131_v53 = vsel %vm544_vm14, %v1129_v52, 0.0 }
 0x855   : > { %v1124_v54 = vpop.xlane.xlu0 %1123  ;;  %1132 = vadd.xlane.f32.xlu2 %v1131_v53 }
 0x856   : > { %v1126_v14 = vmul.f32 %v1124_v54, %v1687_v13 }
 0x858   : > { %v1747_v55 = vsub.f32 %v1118_v12, %v1126_v14 }
 0x85a   : > { %v1130_v56 = vmul.f32 %v1747_v55, %v1747_v55 }
 0x85c   : > { %v1134_v8 = vsel %vm544_vm14, %v1130_v56, 0.0 }
 0x85d   : > { %1135 = vadd.xlane.f32.xlu0 %v1134_v8 }
 0x8c8   : > { %v1133_v57 = vpop.xlane.xlu2 %1132 }
 0x8c9   : > { %v1137_v58 = vmul.f32 %v1133_v57, %v1687_v13 }
 0x8cb   : > { %v1139_v59 = vadd.f32 1e-12, %v1137_v58 }
 0x8cd   : > { %1479 = vrsqrt.f32 %v1139_v59  ;;  %vm1148_vm10 = vcmp.eq.f32.partialorder %v1139_v59, inf  ;;  %v1151_v10 = vand.u32 2147483648, %v1139_v59  ;;  %vm1150_vm11 = vcmp.eq.f32.partialorder %v1139_v59, 0.0 }
 0x8d0   : > { %v1136_v60 = vpop.xlane.xlu0 %1135 }
 0x8d1   : > { %v1138_v61 = vmul.f32 %v1136_v60, %v1687_v13 }
 0x8d3   : > { %v1480_v62 = vpop.eup %1479  ;;  %v1140_v63 = vadd.f32 1e-12, %v1138_v61 }
 0x8d4   : > { %v1142_v0 = vmul.f32 %v1480_v62, %v1139_v59 }
 0x8d5   : > { %1481 = vrsqrt.f32 %v1140_v63  ;;  %vm1160_vm12 = vcmp.eq.f32.partialorder %v1140_v63, inf  ;;  %v1163_v17 = vand.u32 2147483648, %v1140_v63  ;;  %vm1162_vm13 = vcmp.eq.f32.partialorder %v1140_v63, 0.0 }
 0x8d6   : > { %v1143_v1 = vmul.f32 %v1480_v62, %v1142_v0 }
 0x8d8   : > { %v1144_v2 = vmul.f32 0.5, %v1143_v1 }
 0x8da   : > { %v1145_v3 = vsub.f32 1.5, %v1144_v2 }
 0x8db   : > { %v1482_v4 = vpop.eup %1481 }
 0x8dc   : > { %v1146_v5 = vmul.f32 %v1480_v62, %v1145_v3  ;;  %v1154_v6 = vmul.f32 %v1482_v4, %v1140_v63 }
 0x8de   : > { %v1147_v7 = vmul.f32 %v1146_v5, %v1139_v59  ;;  %v1155_v9 = vmul.f32 %v1482_v4, %v1154_v6 }
 0x8e0   : > { %v1149_v15 = vsel %vm1148_vm10, %v1139_v59, %v1147_v7  ;;  %v1156_v18 = vmul.f32 0.5, %v1155_v9 }
 0x8e1   : > { %v1152_v19 = vsel %vm1150_vm11, %v1151_v10, %v1149_v15 }
 0x8e2   : > { %1483 = vrcp.f32 %v1152_v19  ;;  %v1157_v13 = vsub.f32 1.5, %v1156_v18  ;;  %v1176_v30 = vand.u32 2147483648, %v1152_v19  ;;  %v1174_v32 = vand.u32 2147483647, %v1152_v19 }
 0x8e3   : > { %vm1170_vm0 = vweird.f32 %v1152_v19 }
 0x8e4   : > { %v1158_v21 = vmul.f32 %v1482_v4, %v1157_v13  ;;  %v1177_v29 = vor.u32 1.1754944e-38, %v1176_v30  ;;  %vm1175_vm2 = vcmp.eq.f32.partialorder %v1174_v32, 8.507059e+37 }
 0x8e6   : > { %v1159_v20 = vmul.f32 %v1158_v21, %v1140_v63 }
 0x8e8   : > { %v1484_v23 = vpop.eup %1483  ;;  %v1161_v26 = vsel %vm1160_vm12, %v1140_v63, %v1159_v20 }
 0x8e9   : > { %v1166_v25 = vmul.f32 %v1484_v23, %v1152_v19  ;;  %v1164_v27 = vsel %vm1162_vm13, %v1163_v17, %v1161_v26  ;;  %vm1171_vm15 = vweird.f32 %v1484_v23 }
 0x8ea   : > { %1485 = vrcp.f32 %v1164_v27  ;;  %vm1172_vm1 = vmor %vm1170_vm0, %vm1171_vm15  ;;  %v1191_v42 = vand.u32 2147483648, %v1164_v27  ;;  %v1189_v44 = vand.u32 2147483647, %v1164_v27  ;;  %vm1185_vm4 = vweird.f32 %v1164_v27 }
 0x8eb   : > { %v1167_v28 = vsub.f32 1.0, %v1166_v25 }
 0x8ec   : > { %v1192_v46 = vor.u32 1.1754944e-38, %v1191_v42  ;;  %vm1190_vm6 = vcmp.eq.f32.partialorder %v1189_v44, 8.507059e+37 }
 0x8ed   : > { %v1168_v31 = vmul.f32 %v1484_v23, %v1167_v28 }
 0x8ef   : > { %v1169_v33 = vadd.f32 %v1484_v23, %v1168_v31 }
 0x8f0   : > { %v1486_v34 = vpop.eup %1485 }
 0x8f1   : > { %v1173_v36 = vsel %vm1172_vm1, %v1484_v23, %v1169_v33  ;;  %v1181_v37 = vmul.f32 %v1486_v34, %v1164_v27  ;;  %vm1186_vm3 = vweird.f32 %v1486_v34 }
 0x8f2   : > { %v1178_v11 = vsel %vm1175_vm2, %v1177_v29, %v1173_v36  ;;  %vm1187_vm5 = vmor %vm1185_vm4, %vm1186_vm3 }
 0x8f3   : > { %v1179_v39 = vmul.f32 %v1178_v11, %v1127_v51  ;;  %v1182_v40 = vsub.f32 1.0, %v1181_v37 }
 0x8f5   : > { %v1196_v41 = vmul.f32 %v1195_v35, %v1179_v39  ;;  %v1183_v43 = vmul.f32 %v1486_v34, %v1182_v40 }
 0x8f7   : > { %v1199_v24 = vadd.f32 %v1198_v38, %v1196_v41  ;;  %v1184_v45 = vadd.f32 %v1486_v34, %v1183_v43 }
 0x8f9   : > { %1201 = vst.msk [vmem:[#allocation2] sm:$0xff] %vm544_vm14, %v1199_v24  ;;  %v1188_v47 = vsel %vm1187_vm5, %v1486_v34, %v1184_v45 }
 0x8fa   : > { %v1193_v48 = vsel %vm1190_vm6, %v1192_v46, %v1188_v47 }
 0x8fb   : > { %v1194_v12 = vmul.f32 %v1193_v48, %v1747_v55 }
 0x8fd   : > { %v1197_v16 = vmul.f32 %v1195_v35, %v1194_v12  ;;  %1206 = sbr.rel (%p1391_p5) target bundleno = 2451 (0x993), region = 68 }
 0x8ff   : > { %v1200_v22 = vadd.f32 %v1198_v38, %v1197_v16 }
 0x901   : > { %1202 = vst.msk [vmem:[#allocation2 + $0x8] sm:$0xff] %vm544_vm14, %v1200_v22 }
 0x902   : > { %v1418_v49 = vld [vmem:[%s1787_s8 + $0x8] sm:$0xff]  ;;  %v1417_v50 = vld [vmem:[%s1787_s8] sm:$0xff]  ;;  %v1207_v51 = vpack.c.bf16 %v1200_v22, %v1199_v24 }
 0x903   : > { %1237 = vmatpush.bf16.msra.mxu0 %v1418_v49  ;;  %v1487_v52 = vld [vmem:[%s1788_s9] ss:$0 sm:$0xff] }
 0x907   : > { %1238 = vmatpush.bf16.msra.mxu0 %v1417_v50 }
 0x90a   : > { %1400 = vmatmul.msk.bf16.vlgmr.msra.gmra.mxu0 %vm544_vm14, %v1207_v51 }
 0x987   : > { %v1240_v53 = vpop.f32.mrf.mxu0 }
 0x988   : > { %v1241_v54 = vadd.f32 %v1487_v52, %v1240_v53 }
 0x98a   : > { %1245 = vst [vmem:[%s1789_s10] sm:$0xff] %v1241_v54 }
 0x98f   : > { %v1242_v14 = vpop.f32.mrf.mxu0 }
 0x990   : > { %v1243_v55 = vadd.f32 %v1487_v52, %v1242_v14 }
 0x992   : > { %1246 = vst [vmem:[%s1789_s10 + $0x8] sm:$0xff] %v1243_v55 }
 0x993 PF: > { %s20_s13 = sadd.s32 1, %s1494_s13  }
 0x994   : > { %p17_p6 = scmp.ge.s32.totalorder %s20_s13, 4  }
 0x996   :  { %19 = sbr.rel (!%p17_p6) target bundleno = 1 (0x1), region = 106 }

</bundles_post_ra>
